<compile_context>
chip_gen: v5e
topology: v5e:2x2
jax: 0.10.0
libtpu: 0.0.40
codegen_flags: <defaults>
</compile_context>

<pallas_src>
import functools

import jax
import jax.numpy as jnp
from jax import lax
from jax.experimental import pallas as pl
from jax.experimental.pallas import tpu as pltpu


def _build_kernel(num_layers: int, hidden: int, seq: int, bp: int):
    H, Bp, L = hidden, bp, num_layers
    H3 = 3 * H
    unroll = True if seq <= 16 else 8

    def kernel(*refs):
        # refs layout:
        #   [0]              x2       (seq*Bp, I0)   time-major rows: row = t*Bp + b
        #   [1 : 1+3L]       per layer: W_ih^T (I_l, 3H), W_hh^T (H, 3H), bias (2, 3H)
        #                    bias row 0 = b_ih = [b_ir|b_iz|b_in], row 1 = b_hh
        #   [1+3L], [2+3L]   fc_w^T (H, P), fc_b (1, P)
        #   [3+3L]           out (Bp, P)
        #   [4+3L:]          scratch: gx (seq*Bp, 3H), buf (seq*Bp, H)
        x_ref = refs[0]
        layer_refs = refs[1:1 + 3 * L]
        fcw_ref = refs[1 + 3 * L]
        fcb_ref = refs[2 + 3 * L]
        out_ref = refs[3 + 3 * L]
        gx_ref, buf_ref = refs[4 + 3 * L:]

        h_last = None
        for l in range(L):
            wih_ref, whh_ref, b_ref = layer_refs[3 * l:3 * l + 3]

            # Once-per-layer loads / broadcasts (hoisted off the recurrence).
            whh_v = whh_ref[...]                                   # (H, 3H), stays in vregs
            b_all = b_ref[...]                                     # (2, 3H)
            bx_v = b_all[0:1, :]                                   # (1, 3H)  input-side bias
            bh_b = jnp.broadcast_to(b_all[1:2, :], (Bp, H3))       # (Bp, 3H) hidden-side bias

            # ---- fused input projection: ONE matmul per layer, off the serial chain ----
            src = x_ref[...] if l == 0 else buf_ref[...]           # (seq*Bp, I_l)
            gx_ref[...] = (jnp.dot(src, wih_ref[...],
                                   preferred_element_type=jnp.float32) + bx_v)

            write_buf = l < (L - 1)    # last layer: FC only needs the final carry

            # ---- recurrence: ONE (Bp,H)@(H,3H) MXU dot + VPU/EUP per step -------------
            def step(t, h):
                row = pl.multiple_of(t * Bp, 8)                    # Bp % 8 == 0 by padding
                gx_t = gx_ref[pl.ds(row, Bp), :]                   # (Bp, 3H), aligned load
                gh = jnp.dot(h, whh_v,
                             preferred_element_type=jnp.float32) + bh_b
                r = jax.nn.sigmoid(gx_t[:, 0:H] + gh[:, 0:H])
                z = jax.nn.sigmoid(gx_t[:, H:2 * H] + gh[:, H:2 * H])
                n = jnp.tanh(gx_t[:, 2 * H:] + r * gh[:, 2 * H:])
                h_new = n + z * (h - n)                            # == (1 - z) * n + z * h
                if write_buf:
                    buf_ref[pl.ds(row, Bp), :] = h_new             # next layer's input
                return h_new

            h_last = lax.fori_loop(0, seq, step,
                                   jnp.zeros((Bp, H), jnp.float32),
                                   unroll=unroll)

        # y[:, -1, :] of the last GRU layer is exactly the final carry.
        out_ref[...] = (jnp.dot(h_last, fcw_ref[...],
                                preferred_element_type=jnp.float32) + fcb_ref[...])

    return kernel


def init_params(key, input_size, hidden, num_layers, pred_len):
    """Deterministic init mimicking PyTorch's U(-1/sqrt(H), 1/sqrt(H))."""
    k = 1.0 / jnp.sqrt(jnp.float32(hidden))
    params = {"layers": [], "fc_w": None, "fc_b": None}
    for l in range(num_layers):
        in_l = input_size if l == 0 else hidden
        key, k1, k2, k3, k4 = jax.random.split(key, 5)
        params["layers"].append({
            "w_ih": jax.random.uniform(k1, (3 * hidden, in_l), jnp.float32, -k, k),
            "w_hh": jax.random.uniform(k2, (3 * hidden, hidden), jnp.float32, -k, k),
            "b_ih": jax.random.uniform(k3, (3 * hidden,), jnp.float32, -k, k),
            "b_hh": jax.random.uniform(k4, (3 * hidden,), jnp.float32, -k, k),
        })
    key, k1, k2 = jax.random.split(key, 3)
    params["fc_w"] = jax.random.uniform(k1, (pred_len, hidden), jnp.float32, -k, k)
    params["fc_b"] = jax.random.uniform(k2, (pred_len,), jnp.float32, -k, k)
    return params


@functools.partial(jax.jit, static_argnames=("hidden", "num_layers", "pred_len"))
def my_gru_net_pallas(x, params, *, hidden, num_layers, pred_len):
    """x: (batch, seq, input_size) float32  ->  (batch, pred_len, 1)."""
    batch, seq, input_size = x.shape
    Bp = ((batch + 7) // 8) * 8          # pad batch to a sublane multiple (8)

    # Time-major, flattened, batch-padded: row t*Bp + b  <->  x[b, t, :] (b < batch).
    xt = jnp.transpose(x, (1, 0, 2)).astype(jnp.float32)       # (seq, B, I)
    if Bp != batch:
        xt = jnp.pad(xt, ((0, 0), (0, Bp - batch), (0, 0)))
    x2 = xt.reshape(seq * Bp, input_size)

    flat = []
    for l in range(num_layers):
        p = params["layers"][l]
        # PyTorch: w_ih (3H, I_l), w_hh (3H, H), biases (3H,), gate order [r, z, n].
        # NOTE: kept float32 for exact parity with the f32 reference; cast to bf16 on
        # v6e/v7x for 2x MXU rate if ~1e-2 parity is acceptable.
        flat += [
            p["w_ih"].T,                                   # (I_l, 3H)  columns [r|z|n]
            p["w_hh"].T,                                   # (H, 3H)
            jnp.stack([p["b_ih"], p["b_hh"]], axis=0),     # (2, 3H)
        ]
    flat += [params["fc_w"].T, params["fc_b"].reshape(1, -1)]     # (H, P), (1, P)

    kernel = _build_kernel(num_layers, hidden, seq, Bp)
    n_inputs = 1 + len(flat)

    out = pl.pallas_call(
        kernel,
        out_shape=jax.ShapeDtypeStruct((Bp, pred_len), jnp.float32),
        in_specs=[pl.BlockSpec(memory_space=pltpu.MemorySpace.VMEM)] * n_inputs,
        out_specs=pl.BlockSpec(memory_space=pltpu.MemorySpace.VMEM),
        scratch_shapes=[
            pltpu.VMEM((seq * Bp, 3 * hidden), jnp.float32),   # fused gate projections
            pltpu.VMEM((seq * Bp, hidden), jnp.float32),       # inter-layer hidden buffer
        ],
    )(x2, *flat)

    return out[:batch].reshape(batch, pred_len, 1)


def my_gru_net_ref(x, params, *, hidden, num_layers, pred_len):
    """Pure-JAX reference (mirrors torch.nn.GRU + Linear) for a correctness check."""
    batch, seq, _ = x.shape
    layer_in = x.astype(jnp.float32)
    for l in range(num_layers):
        p = params["layers"][l]
        w_ih, w_hh, b_ih, b_hh = p["w_ih"], p["w_hh"], p["b_ih"], p["b_hh"]
        H = hidden

        def step(h, x_t):
            gx = x_t @ w_ih.T + b_ih
            gh = h @ w_hh.T + b_hh
            r = jax.nn.sigmoid(gx[:, :H] + gh[:, :H])
            z = jax.nn.sigmoid(gx[:, H:2 * H] + gh[:, H:2 * H])
            n = jnp.tanh(gx[:, 2 * H:] + r * gh[:, 2 * H:])
            h_new = (1.0 - z) * n + z * h
            return h_new, h_new

        h0 = jnp.zeros((batch, hidden), jnp.float32)
        _, ys = lax.scan(step, h0, jnp.transpose(layer_in, (1, 0, 2)))
        layer_in = jnp.transpose(ys, (1, 0, 2))
    last = layer_in[:, -1, :]
    y = last @ params["fc_w"].T + params["fc_b"]
    return y.reshape(batch, pred_len, 1)


if __name__ == "__main__":
    batch, seq, input_size = 2, 8, 4
    hidden, num_layers, pred_len = 32, 2, 4

    key = jax.random.PRNGKey(0)
    key, kx, kp = jax.random.split(key, 3)
    x = jax.random.normal(kx, (batch, seq, input_size), jnp.float32)
    params = init_params(kp, input_size, hidden, num_layers, pred_len)

    out = my_gru_net_pallas(x, params, hidden=hidden,
                            num_layers=num_layers, pred_len=pred_len)
    out = jax.block_until_ready(out)

    ref = my_gru_net_ref(x, params, hidden=hidden,
                         num_layers=num_layers, pred_len=pred_len)
    assert out.shape == (batch, pred_len, 1)
    assert jnp.allclose(out, ref, atol=1e-5, rtol=1e-5), "mismatch vs JAX reference"

    print("KERNEL_OK")
</pallas_src>

<mosaic_0001>
module attributes {stable_mosaic.version = 11 : i64} {
  func.func @kernel(%arg0: memref<64x4xf32, #tpu.memory_space<vmem>>, %arg1: memref<4x96xf32, #tpu.memory_space<vmem>>, %arg2: memref<32x96xf32, #tpu.memory_space<vmem>>, %arg3: memref<2x96xf32, #tpu.memory_space<vmem>>, %arg4: memref<32x96xf32, #tpu.memory_space<vmem>>, %arg5: memref<32x96xf32, #tpu.memory_space<vmem>>, %arg6: memref<2x96xf32, #tpu.memory_space<vmem>>, %arg7: memref<32x4xf32, #tpu.memory_space<vmem>>, %arg8: memref<1x4xf32, #tpu.memory_space<vmem>>, %arg9: memref<8x4xf32, #tpu.memory_space<vmem>>, %arg10: memref<64x96xf32, #tpu.memory_space<vmem>>, %arg11: memref<64x32xf32, #tpu.memory_space<vmem>>) attributes {dimension_semantics = [], scalar_prefetch = 0 : i64, scratch_operands = 2 : i64, tpu.core_type = #tpu.core_type<tc>} {
    %c0 = arith.constant 0 : index
    %c0_0 = arith.constant 0 : index
    %0 = vector.load %arg2[%c0, %c0_0] : memref<32x96xf32, #tpu.memory_space<vmem>>, vector<32x96xf32>
    %c0_1 = arith.constant 0 : index
    %c0_2 = arith.constant 0 : index
    %1 = vector.load %arg3[%c0_1, %c0_2] : memref<2x96xf32, #tpu.memory_space<vmem>>, vector<2x96xf32>
    %2 = vector.extract_strided_slice %1 {offsets = [0, 0], sizes = [1, 96], strides = [1, 1]} : vector<2x96xf32> to vector<1x96xf32>
    %3 = vector.extract_strided_slice %1 {offsets = [1, 0], sizes = [1, 96], strides = [1, 1]} : vector<2x96xf32> to vector<1x96xf32>
    %4 = vector.shape_cast %3 : vector<1x96xf32> to vector<1x96xf32>
    %5 = vector.broadcast %4 : vector<1x96xf32> to vector<8x96xf32>
    %c0_3 = arith.constant 0 : index
    %c0_4 = arith.constant 0 : index
    %6 = vector.load %arg0[%c0_3, %c0_4] : memref<64x4xf32, #tpu.memory_space<vmem>>, vector<64x4xf32>
    %c0_5 = arith.constant 0 : index
    %c0_6 = arith.constant 0 : index
    %7 = vector.load %arg1[%c0_5, %c0_6] : memref<4x96xf32, #tpu.memory_space<vmem>>, vector<4x96xf32>
    %cst = arith.constant dense<0.000000e+00> : vector<64x96xf32>
    %8 = tpu.matmul %6, %7, %cst {dimension_numbers = #tpu.dot_dimension_numbers<[1], [0], [0], [1], [0, 0, 1, 1], [], []>} : vector<64x4xf32>, vector<4x96xf32>, vector<64x96xf32> -> vector<64x96xf32>
    %9 = vector.broadcast %2 : vector<1x96xf32> to vector<64x96xf32>
    %10 = arith.addf %8, %9 : vector<64x96xf32>
    %c0_7 = arith.constant 0 : index
    %c0_8 = arith.constant 0 : index
    %11 = vector.load %arg10[%c0_7, %c0_8] : memref<64x96xf32, #tpu.memory_space<vmem>>, vector<64x96xf32>
    tpu.vector_store %arg10[%c0_7, %c0_8], %10 {strides = array<i32>} : memref<64x96xf32, #tpu.memory_space<vmem>>, vector<64x96xf32>,
    %cst_9 = arith.constant 0.000000e+00 : f32
    %12 = vector.broadcast %cst_9 : f32 to vector<8x32xf32>
    %c0_i32 = arith.constant 0 : i32
    %c8_i32 = arith.constant 8 : i32
    %13 = arith.muli %c0_i32, %c8_i32 : i32
    %14 = tpu.assume_multiple %13, 8 : i32
    %15 = arith.index_cast %14 : i32 to index
    %c0_10 = arith.constant 0 : index
    %16 = vector.load %arg10[%15, %c0_10] : memref<64x96xf32, #tpu.memory_space<vmem>>, vector<8x96xf32>
    %cst_11 = arith.constant dense<0.000000e+00> : vector<8x96xf32>
    %17 = tpu.matmul %12, %0, %cst_11 {dimension_numbers = #tpu.dot_dimension_numbers<[1], [0], [0], [1], [0, 0, 1, 1], [], []>} : vector<8x32xf32>, vector<32x96xf32>, vector<8x96xf32> -> vector<8x96xf32>
    %18 = arith.addf %17, %5 : vector<8x96xf32>
    %19 = vector.extract_strided_slice %16 {offsets = [0, 0], sizes = [8, 32], strides = [1, 1]} : vector<8x96xf32> to vector<8x32xf32>
    %20 = vector.extract_strided_slice %18 {offsets = [0, 0], sizes = [8, 32], strides = [1, 1]} : vector<8x96xf32> to vector<8x32xf32>
    %21 = arith.addf %19, %20 : vector<8x32xf32>
    %22 = arith.negf %21 : vector<8x32xf32>
    %23 = math.exp %22 : vector<8x32xf32>
    %cst_12 = arith.constant 1.000000e+00 : f32
    %24 = vector.broadcast %cst_12 : f32 to vector<8x32xf32>
    %25 = arith.addf %24, %23 : vector<8x32xf32>
    %26 = arith.divf %24, %25 : vector<8x32xf32>
    %27 = vector.extract_strided_slice %16 {offsets = [0, 32], sizes = [8, 32], strides = [1, 1]} : vector<8x96xf32> to vector<8x32xf32>
    %28 = vector.extract_strided_slice %18 {offsets = [0, 32], sizes = [8, 32], strides = [1, 1]} : vector<8x96xf32> to vector<8x32xf32>
    %29 = arith.addf %27, %28 : vector<8x32xf32>
    %30 = arith.negf %29 : vector<8x32xf32>
    %31 = math.exp %30 : vector<8x32xf32>
    %cst_13 = arith.constant 1.000000e+00 : f32
    %32 = vector.broadcast %cst_13 : f32 to vector<8x32xf32>
    %33 = arith.addf %32, %31 : vector<8x32xf32>
    %34 = arith.divf %32, %33 : vector<8x32xf32>
    %35 = vector.extract_strided_slice %16 {offsets = [0, 64], sizes = [8, 32], strides = [1, 1]} : vector<8x96xf32> to vector<8x32xf32>
    %36 = vector.extract_strided_slice %18 {offsets = [0, 64], sizes = [8, 32], strides = [1, 1]} : vector<8x96xf32> to vector<8x32xf32>
    %37 = arith.mulf %26, %36 : vector<8x32xf32>
    %38 = arith.addf %35, %37 : vector<8x32xf32>
    %39 = math.tanh %38 : vector<8x32xf32>
    %40 = arith.subf %12, %39 : vector<8x32xf32>
    %41 = arith.mulf %34, %40 : vector<8x32xf32>
    %42 = arith.addf %39, %41 : vector<8x32xf32>
    %43 = arith.index_cast %14 : i32 to index
    %c0_14 = arith.constant 0 : index
    %44 = vector.load %arg11[%43, %c0_14] : memref<64x32xf32, #tpu.memory_space<vmem>>, vector<8x32xf32>
    tpu.vector_store %arg11[%43, %c0_14], %42 {strides = array<i32>} : memref<64x32xf32, #tpu.memory_space<vmem>>, vector<8x32xf32>,
    %c1_i32 = arith.constant 1 : i32
    %c8_i32_15 = arith.constant 8 : i32
    %45 = arith.muli %c1_i32, %c8_i32_15 : i32
    %46 = tpu.assume_multiple %45, 8 : i32
    %47 = arith.index_cast %46 : i32 to index
    %c0_16 = arith.constant 0 : index
    %48 = vector.load %arg10[%47, %c0_16] : memref<64x96xf32, #tpu.memory_space<vmem>>, vector<8x96xf32>
    %cst_17 = arith.constant dense<0.000000e+00> : vector<8x96xf32>
    %49 = tpu.matmul %42, %0, %cst_17 {dimension_numbers = #tpu.dot_dimension_numbers<[1], [0], [0], [1], [0, 0, 1, 1], [], []>} : vector<8x32xf32>, vector<32x96xf32>, vector<8x96xf32> -> vector<8x96xf32>
    %50 = arith.addf %49, %5 : vector<8x96xf32>
    %51 = vector.extract_strided_slice %48 {offsets = [0, 0], sizes = [8, 32], strides = [1, 1]} : vector<8x96xf32> to vector<8x32xf32>
    %52 = vector.extract_strided_slice %50 {offsets = [0, 0], sizes = [8, 32], strides = [1, 1]} : vector<8x96xf32> to vector<8x32xf32>
    %53 = arith.addf %51, %52 : vector<8x32xf32>
    %54 = arith.negf %53 : vector<8x32xf32>
    %55 = math.exp %54 : vector<8x32xf32>
    %cst_18 = arith.constant 1.000000e+00 : f32
    %56 = vector.broadcast %cst_18 : f32 to vector<8x32xf32>
    %57 = arith.addf %56, %55 : vector<8x32xf32>
    %58 = arith.divf %56, %57 : vector<8x32xf32>
    %59 = vector.extract_strided_slice %48 {offsets = [0, 32], sizes = [8, 32], strides = [1, 1]} : vector<8x96xf32> to vector<8x32xf32>
    %60 = vector.extract_strided_slice %50 {offsets = [0, 32], sizes = [8, 32], strides = [1, 1]} : vector<8x96xf32> to vector<8x32xf32>
    %61 = arith.addf %59, %60 : vector<8x32xf32>
    %62 = arith.negf %61 : vector<8x32xf32>
    %63 = math.exp %62 : vector<8x32xf32>
    %cst_19 = arith.constant 1.000000e+00 : f32
    %64 = vector.broadcast %cst_19 : f32 to vector<8x32xf32>
    %65 = arith.addf %64, %63 : vector<8x32xf32>
    %66 = arith.divf %64, %65 : vector<8x32xf32>
    %67 = vector.extract_strided_slice %48 {offsets = [0, 64], sizes = [8, 32], strides = [1, 1]} : vector<8x96xf32> to vector<8x32xf32>
    %68 = vector.extract_strided_slice %50 {offsets = [0, 64], sizes = [8, 32], strides = [1, 1]} : vector<8x96xf32> to vector<8x32xf32>
    %69 = arith.mulf %58, %68 : vector<8x32xf32>
    %70 = arith.addf %67, %69 : vector<8x32xf32>
    %71 = math.tanh %70 : vector<8x32xf32>
    %72 = arith.subf %42, %71 : vector<8x32xf32>
    %73 = arith.mulf %66, %72 : vector<8x32xf32>
    %74 = arith.addf %71, %73 : vector<8x32xf32>
    %75 = arith.index_cast %46 : i32 to index
    %c0_20 = arith.constant 0 : index
    %76 = vector.load %arg11[%75, %c0_20] : memref<64x32xf32, #tpu.memory_space<vmem>>, vector<8x32xf32>
    tpu.vector_store %arg11[%75, %c0_20], %74 {strides = array<i32>} : memref<64x32xf32, #tpu.memory_space<vmem>>, vector<8x32xf32>,
    %c2_i32 = arith.constant 2 : i32
    %c8_i32_21 = arith.constant 8 : i32
    %77 = arith.muli %c2_i32, %c8_i32_21 : i32
    %78 = tpu.assume_multiple %77, 8 : i32
    %79 = arith.index_cast %78 : i32 to index
    %c0_22 = arith.constant 0 : index
    %80 = vector.load %arg10[%79, %c0_22] : memref<64x96xf32, #tpu.memory_space<vmem>>, vector<8x96xf32>
    %cst_23 = arith.constant dense<0.000000e+00> : vector<8x96xf32>
    %81 = tpu.matmul %74, %0, %cst_23 {dimension_numbers = #tpu.dot_dimension_numbers<[1], [0], [0], [1], [0, 0, 1, 1], [], []>} : vector<8x32xf32>, vector<32x96xf32>, vector<8x96xf32> -> vector<8x96xf32>
    %82 = arith.addf %81, %5 : vector<8x96xf32>
    %83 = vector.extract_strided_slice %80 {offsets = [0, 0], sizes = [8, 32], strides = [1, 1]} : vector<8x96xf32> to vector<8x32xf32>
    %84 = vector.extract_strided_slice %82 {offsets = [0, 0], sizes = [8, 32], strides = [1, 1]} : vector<8x96xf32> to vector<8x32xf32>
    %85 = arith.addf %83, %84 : vector<8x32xf32>
    %86 = arith.negf %85 : vector<8x32xf32>
    %87 = math.exp %86 : vector<8x32xf32>
    %cst_24 = arith.constant 1.000000e+00 : f32
    %88 = vector.broadcast %cst_24 : f32 to vector<8x32xf32>
    %89 = arith.addf %88, %87 : vector<8x32xf32>
    %90 = arith.divf %88, %89 : vector<8x32xf32>
    %91 = vector.extract_strided_slice %80 {offsets = [0, 32], sizes = [8, 32], strides = [1, 1]} : vector<8x96xf32> to vector<8x32xf32>
    %92 = vector.extract_strided_slice %82 {offsets = [0, 32], sizes = [8, 32], strides = [1, 1]} : vector<8x96xf32> to vector<8x32xf32>
    %93 = arith.addf %91, %92 : vector<8x32xf32>
    %94 = arith.negf %93 : vector<8x32xf32>
    %95 = math.exp %94 : vector<8x32xf32>
    %cst_25 = arith.constant 1.000000e+00 : f32
    %96 = vector.broadcast %cst_25 : f32 to vector<8x32xf32>
    %97 = arith.addf %96, %95 : vector<8x32xf32>
    %98 = arith.divf %96, %97 : vector<8x32xf32>
    %99 = vector.extract_strided_slice %80 {offsets = [0, 64], sizes = [8, 32], strides = [1, 1]} : vector<8x96xf32> to vector<8x32xf32>
    %100 = vector.extract_strided_slice %82 {offsets = [0, 64], sizes = [8, 32], strides = [1, 1]} : vector<8x96xf32> to vector<8x32xf32>
    %101 = arith.mulf %90, %100 : vector<8x32xf32>
    %102 = arith.addf %99, %101 : vector<8x32xf32>
    %103 = math.tanh %102 : vector<8x32xf32>
    %104 = arith.subf %74, %103 : vector<8x32xf32>
    %105 = arith.mulf %98, %104 : vector<8x32xf32>
    %106 = arith.addf %103, %105 : vector<8x32xf32>
    %107 = arith.index_cast %78 : i32 to index
    %c0_26 = arith.constant 0 : index
    %108 = vector.load %arg11[%107, %c0_26] : memref<64x32xf32, #tpu.memory_space<vmem>>, vector<8x32xf32>
    tpu.vector_store %arg11[%107, %c0_26], %106 {strides = array<i32>} : memref<64x32xf32, #tpu.memory_space<vmem>>, vector<8x32xf32>,
    %c3_i32 = arith.constant 3 : i32
    %c8_i32_27 = arith.constant 8 : i32
    %109 = arith.muli %c3_i32, %c8_i32_27 : i32
    %110 = tpu.assume_multiple %109, 8 : i32
    %111 = arith.index_cast %110 : i32 to index
    %c0_28 = arith.constant 0 : index
    %112 = vector.load %arg10[%111, %c0_28] : memref<64x96xf32, #tpu.memory_space<vmem>>, vector<8x96xf32>
    %cst_29 = arith.constant dense<0.000000e+00> : vector<8x96xf32>
    %113 = tpu.matmul %106, %0, %cst_29 {dimension_numbers = #tpu.dot_dimension_numbers<[1], [0], [0], [1], [0, 0, 1, 1], [], []>} : vector<8x32xf32>, vector<32x96xf32>, vector<8x96xf32> -> vector<8x96xf32>
    %114 = arith.addf %113, %5 : vector<8x96xf32>
    %115 = vector.extract_strided_slice %112 {offsets = [0, 0], sizes = [8, 32], strides = [1, 1]} : vector<8x96xf32> to vector<8x32xf32>
    %116 = vector.extract_strided_slice %114 {offsets = [0, 0], sizes = [8, 32], strides = [1, 1]} : vector<8x96xf32> to vector<8x32xf32>
    %117 = arith.addf %115, %116 : vector<8x32xf32>
    %118 = arith.negf %117 : vector<8x32xf32>
    %119 = math.exp %118 : vector<8x32xf32>
    %cst_30 = arith.constant 1.000000e+00 : f32
    %120 = vector.broadcast %cst_30 : f32 to vector<8x32xf32>
    %121 = arith.addf %120, %119 : vector<8x32xf32>
    %122 = arith.divf %120, %121 : vector<8x32xf32>
    %123 = vector.extract_strided_slice %112 {offsets = [0, 32], sizes = [8, 32], strides = [1, 1]} : vector<8x96xf32> to vector<8x32xf32>
    %124 = vector.extract_strided_slice %114 {offsets = [0, 32], sizes = [8, 32], strides = [1, 1]} : vector<8x96xf32> to vector<8x32xf32>
    %125 = arith.addf %123, %124 : vector<8x32xf32>
    %126 = arith.negf %125 : vector<8x32xf32>
    %127 = math.exp %126 : vector<8x32xf32>
    %cst_31 = arith.constant 1.000000e+00 : f32
    %128 = vector.broadcast %cst_31 : f32 to vector<8x32xf32>
    %129 = arith.addf %128, %127 : vector<8x32xf32>
    %130 = arith.divf %128, %129 : vector<8x32xf32>
    %131 = vector.extract_strided_slice %112 {offsets = [0, 64], sizes = [8, 32], strides = [1, 1]} : vector<8x96xf32> to vector<8x32xf32>
    %132 = vector.extract_strided_slice %114 {offsets = [0, 64], sizes = [8, 32], strides = [1, 1]} : vector<8x96xf32> to vector<8x32xf32>
    %133 = arith.mulf %122, %132 : vector<8x32xf32>
    %134 = arith.addf %131, %133 : vector<8x32xf32>
    %135 = math.tanh %134 : vector<8x32xf32>
    %136 = arith.subf %106, %135 : vector<8x32xf32>
    %137 = arith.mulf %130, %136 : vector<8x32xf32>
    %138 = arith.addf %135, %137 : vector<8x32xf32>
    %139 = arith.index_cast %110 : i32 to index
    %c0_32 = arith.constant 0 : index
    %140 = vector.load %arg11[%139, %c0_32] : memref<64x32xf32, #tpu.memory_space<vmem>>, vector<8x32xf32>
    tpu.vector_store %arg11[%139, %c0_32], %138 {strides = array<i32>} : memref<64x32xf32, #tpu.memory_space<vmem>>, vector<8x32xf32>,
    %c4_i32 = arith.constant 4 : i32
    %c8_i32_33 = arith.constant 8 : i32
    %141 = arith.muli %c4_i32, %c8_i32_33 : i32
    %142 = tpu.assume_multiple %141, 8 : i32
    %143 = arith.index_cast %142 : i32 to index
    %c0_34 = arith.constant 0 : index
    %144 = vector.load %arg10[%143, %c0_34] : memref<64x96xf32, #tpu.memory_space<vmem>>, vector<8x96xf32>
    %cst_35 = arith.constant dense<0.000000e+00> : vector<8x96xf32>
    %145 = tpu.matmul %138, %0, %cst_35 {dimension_numbers = #tpu.dot_dimension_numbers<[1], [0], [0], [1], [0, 0, 1, 1], [], []>} : vector<8x32xf32>, vector<32x96xf32>, vector<8x96xf32> -> vector<8x96xf32>
    %146 = arith.addf %145, %5 : vector<8x96xf32>
    %147 = vector.extract_strided_slice %144 {offsets = [0, 0], sizes = [8, 32], strides = [1, 1]} : vector<8x96xf32> to vector<8x32xf32>
    %148 = vector.extract_strided_slice %146 {offsets = [0, 0], sizes = [8, 32], strides = [1, 1]} : vector<8x96xf32> to vector<8x32xf32>
    %149 = arith.addf %147, %148 : vector<8x32xf32>
    %150 = arith.negf %149 : vector<8x32xf32>
    %151 = math.exp %150 : vector<8x32xf32>
    %cst_36 = arith.constant 1.000000e+00 : f32
    %152 = vector.broadcast %cst_36 : f32 to vector<8x32xf32>
    %153 = arith.addf %152, %151 : vector<8x32xf32>
    %154 = arith.divf %152, %153 : vector<8x32xf32>
    %155 = vector.extract_strided_slice %144 {offsets = [0, 32], sizes = [8, 32], strides = [1, 1]} : vector<8x96xf32> to vector<8x32xf32>
    %156 = vector.extract_strided_slice %146 {offsets = [0, 32], sizes = [8, 32], strides = [1, 1]} : vector<8x96xf32> to vector<8x32xf32>
    %157 = arith.addf %155, %156 : vector<8x32xf32>
    %158 = arith.negf %157 : vector<8x32xf32>
    %159 = math.exp %158 : vector<8x32xf32>
    %cst_37 = arith.constant 1.000000e+00 : f32
    %160 = vector.broadcast %cst_37 : f32 to vector<8x32xf32>
    %161 = arith.addf %160, %159 : vector<8x32xf32>
    %162 = arith.divf %160, %161 : vector<8x32xf32>
    %163 = vector.extract_strided_slice %144 {offsets = [0, 64], sizes = [8, 32], strides = [1, 1]} : vector<8x96xf32> to vector<8x32xf32>
    %164 = vector.extract_strided_slice %146 {offsets = [0, 64], sizes = [8, 32], strides = [1, 1]} : vector<8x96xf32> to vector<8x32xf32>
    %165 = arith.mulf %154, %164 : vector<8x32xf32>
    %166 = arith.addf %163, %165 : vector<8x32xf32>
    %167 = math.tanh %166 : vector<8x32xf32>
    %168 = arith.subf %138, %167 : vector<8x32xf32>
    %169 = arith.mulf %162, %168 : vector<8x32xf32>
    %170 = arith.addf %167, %169 : vector<8x32xf32>
    %171 = arith.index_cast %142 : i32 to index
    %c0_38 = arith.constant 0 : index
    %172 = vector.load %arg11[%171, %c0_38] : memref<64x32xf32, #tpu.memory_space<vmem>>, vector<8x32xf32>
    tpu.vector_store %arg11[%171, %c0_38], %170 {strides = array<i32>} : memref<64x32xf32, #tpu.memory_space<vmem>>, vector<8x32xf32>,
    %c5_i32 = arith.constant 5 : i32
    %c8_i32_39 = arith.constant 8 : i32
    %173 = arith.muli %c5_i32, %c8_i32_39 : i32
    %174 = tpu.assume_multiple %173, 8 : i32
    %175 = arith.index_cast %174 : i32 to index
    %c0_40 = arith.constant 0 : index
    %176 = vector.load %arg10[%175, %c0_40] : memref<64x96xf32, #tpu.memory_space<vmem>>, vector<8x96xf32>
    %cst_41 = arith.constant dense<0.000000e+00> : vector<8x96xf32>
    %177 = tpu.matmul %170, %0, %cst_41 {dimension_numbers = #tpu.dot_dimension_numbers<[1], [0], [0], [1], [0, 0, 1, 1], [], []>} : vector<8x32xf32>, vector<32x96xf32>, vector<8x96xf32> -> vector<8x96xf32>
    %178 = arith.addf %177, %5 : vector<8x96xf32>
    %179 = vector.extract_strided_slice %176 {offsets = [0, 0], sizes = [8, 32], strides = [1, 1]} : vector<8x96xf32> to vector<8x32xf32>
    %180 = vector.extract_strided_slice %178 {offsets = [0, 0], sizes = [8, 32], strides = [1, 1]} : vector<8x96xf32> to vector<8x32xf32>
    %181 = arith.addf %179, %180 : vector<8x32xf32>
    %182 = arith.negf %181 : vector<8x32xf32>
    %183 = math.exp %182 : vector<8x32xf32>
    %cst_42 = arith.constant 1.000000e+00 : f32
    %184 = vector.broadcast %cst_42 : f32 to vector<8x32xf32>
    %185 = arith.addf %184, %183 : vector<8x32xf32>
    %186 = arith.divf %184, %185 : vector<8x32xf32>
    %187 = vector.extract_strided_slice %176 {offsets = [0, 32], sizes = [8, 32], strides = [1, 1]} : vector<8x96xf32> to vector<8x32xf32>
    %188 = vector.extract_strided_slice %178 {offsets = [0, 32], sizes = [8, 32], strides = [1, 1]} : vector<8x96xf32> to vector<8x32xf32>
    %189 = arith.addf %187, %188 : vector<8x32xf32>
    %190 = arith.negf %189 : vector<8x32xf32>
    %191 = math.exp %190 : vector<8x32xf32>
    %cst_43 = arith.constant 1.000000e+00 : f32
    %192 = vector.broadcast %cst_43 : f32 to vector<8x32xf32>
    %193 = arith.addf %192, %191 : vector<8x32xf32>
    %194 = arith.divf %192, %193 : vector<8x32xf32>
    %195 = vector.extract_strided_slice %176 {offsets = [0, 64], sizes = [8, 32], strides = [1, 1]} : vector<8x96xf32> to vector<8x32xf32>
    %196 = vector.extract_strided_slice %178 {offsets = [0, 64], sizes = [8, 32], strides = [1, 1]} : vector<8x96xf32> to vector<8x32xf32>
    %197 = arith.mulf %186, %196 : vector<8x32xf32>
    %198 = arith.addf %195, %197 : vector<8x32xf32>
    %199 = math.tanh %198 : vector<8x32xf32>
    %200 = arith.subf %170, %199 : vector<8x32xf32>
    %201 = arith.mulf %194, %200 : vector<8x32xf32>
    %202 = arith.addf %199, %201 : vector<8x32xf32>
    %203 = arith.index_cast %174 : i32 to index
    %c0_44 = arith.constant 0 : index
    %204 = vector.load %arg11[%203, %c0_44] : memref<64x32xf32, #tpu.memory_space<vmem>>, vector<8x32xf32>
    tpu.vector_store %arg11[%203, %c0_44], %202 {strides = array<i32>} : memref<64x32xf32, #tpu.memory_space<vmem>>, vector<8x32xf32>,
    %c6_i32 = arith.constant 6 : i32
    %c8_i32_45 = arith.constant 8 : i32
    %205 = arith.muli %c6_i32, %c8_i32_45 : i32
    %206 = tpu.assume_multiple %205, 8 : i32
    %207 = arith.index_cast %206 : i32 to index
    %c0_46 = arith.constant 0 : index
    %208 = vector.load %arg10[%207, %c0_46] : memref<64x96xf32, #tpu.memory_space<vmem>>, vector<8x96xf32>
    %cst_47 = arith.constant dense<0.000000e+00> : vector<8x96xf32>
    %209 = tpu.matmul %202, %0, %cst_47 {dimension_numbers = #tpu.dot_dimension_numbers<[1], [0], [0], [1], [0, 0, 1, 1], [], []>} : vector<8x32xf32>, vector<32x96xf32>, vector<8x96xf32> -> vector<8x96xf32>
    %210 = arith.addf %209, %5 : vector<8x96xf32>
    %211 = vector.extract_strided_slice %208 {offsets = [0, 0], sizes = [8, 32], strides = [1, 1]} : vector<8x96xf32> to vector<8x32xf32>
    %212 = vector.extract_strided_slice %210 {offsets = [0, 0], sizes = [8, 32], strides = [1, 1]} : vector<8x96xf32> to vector<8x32xf32>
    %213 = arith.addf %211, %212 : vector<8x32xf32>
    %214 = arith.negf %213 : vector<8x32xf32>
    %215 = math.exp %214 : vector<8x32xf32>
    %cst_48 = arith.constant 1.000000e+00 : f32
    %216 = vector.broadcast %cst_48 : f32 to vector<8x32xf32>
    %217 = arith.addf %216, %215 : vector<8x32xf32>
    %218 = arith.divf %216, %217 : vector<8x32xf32>
    %219 = vector.extract_strided_slice %208 {offsets = [0, 32], sizes = [8, 32], strides = [1, 1]} : vector<8x96xf32> to vector<8x32xf32>
    %220 = vector.extract_strided_slice %210 {offsets = [0, 32], sizes = [8, 32], strides = [1, 1]} : vector<8x96xf32> to vector<8x32xf32>
    %221 = arith.addf %219, %220 : vector<8x32xf32>
    %222 = arith.negf %221 : vector<8x32xf32>
    %223 = math.exp %222 : vector<8x32xf32>
    %cst_49 = arith.constant 1.000000e+00 : f32
    %224 = vector.broadcast %cst_49 : f32 to vector<8x32xf32>
    %225 = arith.addf %224, %223 : vector<8x32xf32>
    %226 = arith.divf %224, %225 : vector<8x32xf32>
    %227 = vector.extract_strided_slice %208 {offsets = [0, 64], sizes = [8, 32], strides = [1, 1]} : vector<8x96xf32> to vector<8x32xf32>
    %228 = vector.extract_strided_slice %210 {offsets = [0, 64], sizes = [8, 32], strides = [1, 1]} : vector<8x96xf32> to vector<8x32xf32>
    %229 = arith.mulf %218, %228 : vector<8x32xf32>
    %230 = arith.addf %227, %229 : vector<8x32xf32>
    %231 = math.tanh %230 : vector<8x32xf32>
    %232 = arith.subf %202, %231 : vector<8x32xf32>
    %233 = arith.mulf %226, %232 : vector<8x32xf32>
    %234 = arith.addf %231, %233 : vector<8x32xf32>
    %235 = arith.index_cast %206 : i32 to index
    %c0_50 = arith.constant 0 : index
    %236 = vector.load %arg11[%235, %c0_50] : memref<64x32xf32, #tpu.memory_space<vmem>>, vector<8x32xf32>
    tpu.vector_store %arg11[%235, %c0_50], %234 {strides = array<i32>} : memref<64x32xf32, #tpu.memory_space<vmem>>, vector<8x32xf32>,
    %c7_i32 = arith.constant 7 : i32
    %c8_i32_51 = arith.constant 8 : i32
    %237 = arith.muli %c7_i32, %c8_i32_51 : i32
    %238 = tpu.assume_multiple %237, 8 : i32
    %239 = arith.index_cast %238 : i32 to index
    %c0_52 = arith.constant 0 : index
    %240 = vector.load %arg10[%239, %c0_52] : memref<64x96xf32, #tpu.memory_space<vmem>>, vector<8x96xf32>
    %cst_53 = arith.constant dense<0.000000e+00> : vector<8x96xf32>
    %241 = tpu.matmul %234, %0, %cst_53 {dimension_numbers = #tpu.dot_dimension_numbers<[1], [0], [0], [1], [0, 0, 1, 1], [], []>} : vector<8x32xf32>, vector<32x96xf32>, vector<8x96xf32> -> vector<8x96xf32>
    %242 = arith.addf %241, %5 : vector<8x96xf32>
    %243 = vector.extract_strided_slice %240 {offsets = [0, 0], sizes = [8, 32], strides = [1, 1]} : vector<8x96xf32> to vector<8x32xf32>
    %244 = vector.extract_strided_slice %242 {offsets = [0, 0], sizes = [8, 32], strides = [1, 1]} : vector<8x96xf32> to vector<8x32xf32>
    %245 = arith.addf %243, %244 : vector<8x32xf32>
    %246 = arith.negf %245 : vector<8x32xf32>
    %247 = math.exp %246 : vector<8x32xf32>
    %cst_54 = arith.constant 1.000000e+00 : f32
    %248 = vector.broadcast %cst_54 : f32 to vector<8x32xf32>
    %249 = arith.addf %248, %247 : vector<8x32xf32>
    %250 = arith.divf %248, %249 : vector<8x32xf32>
    %251 = vector.extract_strided_slice %240 {offsets = [0, 32], sizes = [8, 32], strides = [1, 1]} : vector<8x96xf32> to vector<8x32xf32>
    %252 = vector.extract_strided_slice %242 {offsets = [0, 32], sizes = [8, 32], strides = [1, 1]} : vector<8x96xf32> to vector<8x32xf32>
    %253 = arith.addf %251, %252 : vector<8x32xf32>
    %254 = arith.negf %253 : vector<8x32xf32>
    %255 = math.exp %254 : vector<8x32xf32>
    %cst_55 = arith.constant 1.000000e+00 : f32
    %256 = vector.broadcast %cst_55 : f32 to vector<8x32xf32>
    %257 = arith.addf %256, %255 : vector<8x32xf32>
    %258 = arith.divf %256, %257 : vector<8x32xf32>
    %259 = vector.extract_strided_slice %240 {offsets = [0, 64], sizes = [8, 32], strides = [1, 1]} : vector<8x96xf32> to vector<8x32xf32>
    %260 = vector.extract_strided_slice %242 {offsets = [0, 64], sizes = [8, 32], strides = [1, 1]} : vector<8x96xf32> to vector<8x32xf32>
    %261 = arith.mulf %250, %260 : vector<8x32xf32>
    %262 = arith.addf %259, %261 : vector<8x32xf32>
    %263 = math.tanh %262 : vector<8x32xf32>
    %264 = arith.subf %234, %263 : vector<8x32xf32>
    %265 = arith.mulf %258, %264 : vector<8x32xf32>
    %266 = arith.addf %263, %265 : vector<8x32xf32>
    %267 = arith.index_cast %238 : i32 to index
    %c0_56 = arith.constant 0 : index
    %268 = vector.load %arg11[%267, %c0_56] : memref<64x32xf32, #tpu.memory_space<vmem>>, vector<8x32xf32>
    tpu.vector_store %arg11[%267, %c0_56], %266 {strides = array<i32>} : memref<64x32xf32, #tpu.memory_space<vmem>>, vector<8x32xf32>,
    %c8_i32_57 = arith.constant 8 : i32
    %c0_58 = arith.constant 0 : index
    %c0_59 = arith.constant 0 : index
    %269 = vector.load %arg5[%c0_58, %c0_59] : memref<32x96xf32, #tpu.memory_space<vmem>>, vector<32x96xf32>
    %c0_60 = arith.constant 0 : index
    %c0_61 = arith.constant 0 : index
    %270 = vector.load %arg6[%c0_60, %c0_61] : memref<2x96xf32, #tpu.memory_space<vmem>>, vector<2x96xf32>
    %271 = vector.extract_strided_slice %270 {offsets = [0, 0], sizes = [1, 96], strides = [1, 1]} : vector<2x96xf32> to vector<1x96xf32>
    %272 = vector.extract_strided_slice %270 {offsets = [1, 0], sizes = [1, 96], strides = [1, 1]} : vector<2x96xf32> to vector<1x96xf32>
    %273 = vector.shape_cast %272 : vector<1x96xf32> to vector<1x96xf32>
    %274 = vector.broadcast %273 : vector<1x96xf32> to vector<8x96xf32>
    %c0_62 = arith.constant 0 : index
    %c0_63 = arith.constant 0 : index
    %275 = vector.load %arg11[%c0_62, %c0_63] : memref<64x32xf32, #tpu.memory_space<vmem>>, vector<64x32xf32>
    %c0_64 = arith.constant 0 : index
    %c0_65 = arith.constant 0 : index
    %276 = vector.load %arg4[%c0_64, %c0_65] : memref<32x96xf32, #tpu.memory_space<vmem>>, vector<32x96xf32>
    %cst_66 = arith.constant dense<0.000000e+00> : vector<64x96xf32>
    %277 = tpu.matmul %275, %276, %cst_66 {dimension_numbers = #tpu.dot_dimension_numbers<[1], [0], [0], [1], [0, 0, 1, 1], [], []>} : vector<64x32xf32>, vector<32x96xf32>, vector<64x96xf32> -> vector<64x96xf32>
    %278 = vector.broadcast %271 : vector<1x96xf32> to vector<64x96xf32>
    %279 = arith.addf %277, %278 : vector<64x96xf32>
    %c0_67 = arith.constant 0 : index
    %c0_68 = arith.constant 0 : index
    %280 = vector.load %arg10[%c0_67, %c0_68] : memref<64x96xf32, #tpu.memory_space<vmem>>, vector<64x96xf32>
    tpu.vector_store %arg10[%c0_67, %c0_68], %279 {strides = array<i32>} : memref<64x96xf32, #tpu.memory_space<vmem>>, vector<64x96xf32>,
    %cst_69 = arith.constant 0.000000e+00 : f32
    %281 = vector.broadcast %cst_69 : f32 to vector<8x32xf32>
    %c0_i32_70 = arith.constant 0 : i32
    %c8_i32_71 = arith.constant 8 : i32
    %282 = arith.muli %c0_i32_70, %c8_i32_71 : i32
    %283 = tpu.assume_multiple %282, 8 : i32
    %284 = arith.index_cast %283 : i32 to index
    %c0_72 = arith.constant 0 : index
    %285 = vector.load %arg10[%284, %c0_72] : memref<64x96xf32, #tpu.memory_space<vmem>>, vector<8x96xf32>
    %cst_73 = arith.constant dense<0.000000e+00> : vector<8x96xf32>
    %286 = tpu.matmul %281, %269, %cst_73 {dimension_numbers = #tpu.dot_dimension_numbers<[1], [0], [0], [1], [0, 0, 1, 1], [], []>} : vector<8x32xf32>, vector<32x96xf32>, vector<8x96xf32> -> vector<8x96xf32>
    %287 = arith.addf %286, %274 : vector<8x96xf32>
    %288 = vector.extract_strided_slice %285 {offsets = [0, 0], sizes = [8, 32], strides = [1, 1]} : vector<8x96xf32> to vector<8x32xf32>
    %289 = vector.extract_strided_slice %287 {offsets = [0, 0], sizes = [8, 32], strides = [1, 1]} : vector<8x96xf32> to vector<8x32xf32>
    %290 = arith.addf %288, %289 : vector<8x32xf32>
    %291 = arith.negf %290 : vector<8x32xf32>
    %292 = math.exp %291 : vector<8x32xf32>
    %cst_74 = arith.constant 1.000000e+00 : f32
    %293 = vector.broadcast %cst_74 : f32 to vector<8x32xf32>
    %294 = arith.addf %293, %292 : vector<8x32xf32>
    %295 = arith.divf %293, %294 : vector<8x32xf32>
    %296 = vector.extract_strided_slice %285 {offsets = [0, 32], sizes = [8, 32], strides = [1, 1]} : vector<8x96xf32> to vector<8x32xf32>
    %297 = vector.extract_strided_slice %287 {offsets = [0, 32], sizes = [8, 32], strides = [1, 1]} : vector<8x96xf32> to vector<8x32xf32>
    %298 = arith.addf %296, %297 : vector<8x32xf32>
    %299 = arith.negf %298 : vector<8x32xf32>
    %300 = math.exp %299 : vector<8x32xf32>
    %cst_75 = arith.constant 1.000000e+00 : f32
    %301 = vector.broadcast %cst_75 : f32 to vector<8x32xf32>
    %302 = arith.addf %301, %300 : vector<8x32xf32>
    %303 = arith.divf %301, %302 : vector<8x32xf32>
    %304 = vector.extract_strided_slice %285 {offsets = [0, 64], sizes = [8, 32], strides = [1, 1]} : vector<8x96xf32> to vector<8x32xf32>
    %305 = vector.extract_strided_slice %287 {offsets = [0, 64], sizes = [8, 32], strides = [1, 1]} : vector<8x96xf32> to vector<8x32xf32>
    %306 = arith.mulf %295, %305 : vector<8x32xf32>
    %307 = arith.addf %304, %306 : vector<8x32xf32>
    %308 = math.tanh %307 : vector<8x32xf32>
    %309 = arith.subf %281, %308 : vector<8x32xf32>
    %310 = arith.mulf %303, %309 : vector<8x32xf32>
    %311 = arith.addf %308, %310 : vector<8x32xf32>
    %c1_i32_76 = arith.constant 1 : i32
    %c8_i32_77 = arith.constant 8 : i32
    %312 = arith.muli %c1_i32_76, %c8_i32_77 : i32
    %313 = tpu.assume_multiple %312, 8 : i32
    %314 = arith.index_cast %313 : i32 to index
    %c0_78 = arith.constant 0 : index
    %315 = vector.load %arg10[%314, %c0_78] : memref<64x96xf32, #tpu.memory_space<vmem>>, vector<8x96xf32>
    %cst_79 = arith.constant dense<0.000000e+00> : vector<8x96xf32>
    %316 = tpu.matmul %311, %269, %cst_79 {dimension_numbers = #tpu.dot_dimension_numbers<[1], [0], [0], [1], [0, 0, 1, 1], [], []>} : vector<8x32xf32>, vector<32x96xf32>, vector<8x96xf32> -> vector<8x96xf32>
    %317 = arith.addf %316, %274 : vector<8x96xf32>
    %318 = vector.extract_strided_slice %315 {offsets = [0, 0], sizes = [8, 32], strides = [1, 1]} : vector<8x96xf32> to vector<8x32xf32>
    %319 = vector.extract_strided_slice %317 {offsets = [0, 0], sizes = [8, 32], strides = [1, 1]} : vector<8x96xf32> to vector<8x32xf32>
    %320 = arith.addf %318, %319 : vector<8x32xf32>
    %321 = arith.negf %320 : vector<8x32xf32>
    %322 = math.exp %321 : vector<8x32xf32>
    %cst_80 = arith.constant 1.000000e+00 : f32
    %323 = vector.broadcast %cst_80 : f32 to vector<8x32xf32>
    %324 = arith.addf %323, %322 : vector<8x32xf32>
    %325 = arith.divf %323, %324 : vector<8x32xf32>
    %326 = vector.extract_strided_slice %315 {offsets = [0, 32], sizes = [8, 32], strides = [1, 1]} : vector<8x96xf32> to vector<8x32xf32>
    %327 = vector.extract_strided_slice %317 {offsets = [0, 32], sizes = [8, 32], strides = [1, 1]} : vector<8x96xf32> to vector<8x32xf32>
    %328 = arith.addf %326, %327 : vector<8x32xf32>
    %329 = arith.negf %328 : vector<8x32xf32>
    %330 = math.exp %329 : vector<8x32xf32>
    %cst_81 = arith.constant 1.000000e+00 : f32
    %331 = vector.broadcast %cst_81 : f32 to vector<8x32xf32>
    %332 = arith.addf %331, %330 : vector<8x32xf32>
    %333 = arith.divf %331, %332 : vector<8x32xf32>
    %334 = vector.extract_strided_slice %315 {offsets = [0, 64], sizes = [8, 32], strides = [1, 1]} : vector<8x96xf32> to vector<8x32xf32>
    %335 = vector.extract_strided_slice %317 {offsets = [0, 64], sizes = [8, 32], strides = [1, 1]} : vector<8x96xf32> to vector<8x32xf32>
    %336 = arith.mulf %325, %335 : vector<8x32xf32>
    %337 = arith.addf %334, %336 : vector<8x32xf32>
    %338 = math.tanh %337 : vector<8x32xf32>
    %339 = arith.subf %311, %338 : vector<8x32xf32>
    %340 = arith.mulf %333, %339 : vector<8x32xf32>
    %341 = arith.addf %338, %340 : vector<8x32xf32>
    %c2_i32_82 = arith.constant 2 : i32
    %c8_i32_83 = arith.constant 8 : i32
    %342 = arith.muli %c2_i32_82, %c8_i32_83 : i32
    %343 = tpu.assume_multiple %342, 8 : i32
    %344 = arith.index_cast %343 : i32 to index
    %c0_84 = arith.constant 0 : index
    %345 = vector.load %arg10[%344, %c0_84] : memref<64x96xf32, #tpu.memory_space<vmem>>, vector<8x96xf32>
    %cst_85 = arith.constant dense<0.000000e+00> : vector<8x96xf32>
    %346 = tpu.matmul %341, %269, %cst_85 {dimension_numbers = #tpu.dot_dimension_numbers<[1], [0], [0], [1], [0, 0, 1, 1], [], []>} : vector<8x32xf32>, vector<32x96xf32>, vector<8x96xf32> -> vector<8x96xf32>
    %347 = arith.addf %346, %274 : vector<8x96xf32>
    %348 = vector.extract_strided_slice %345 {offsets = [0, 0], sizes = [8, 32], strides = [1, 1]} : vector<8x96xf32> to vector<8x32xf32>
    %349 = vector.extract_strided_slice %347 {offsets = [0, 0], sizes = [8, 32], strides = [1, 1]} : vector<8x96xf32> to vector<8x32xf32>
    %350 = arith.addf %348, %349 : vector<8x32xf32>
    %351 = arith.negf %350 : vector<8x32xf32>
    %352 = math.exp %351 : vector<8x32xf32>
    %cst_86 = arith.constant 1.000000e+00 : f32
    %353 = vector.broadcast %cst_86 : f32 to vector<8x32xf32>
    %354 = arith.addf %353, %352 : vector<8x32xf32>
    %355 = arith.divf %353, %354 : vector<8x32xf32>
    %356 = vector.extract_strided_slice %345 {offsets = [0, 32], sizes = [8, 32], strides = [1, 1]} : vector<8x96xf32> to vector<8x32xf32>
    %357 = vector.extract_strided_slice %347 {offsets = [0, 32], sizes = [8, 32], strides = [1, 1]} : vector<8x96xf32> to vector<8x32xf32>
    %358 = arith.addf %356, %357 : vector<8x32xf32>
    %359 = arith.negf %358 : vector<8x32xf32>
    %360 = math.exp %359 : vector<8x32xf32>
    %cst_87 = arith.constant 1.000000e+00 : f32
    %361 = vector.broadcast %cst_87 : f32 to vector<8x32xf32>
    %362 = arith.addf %361, %360 : vector<8x32xf32>
    %363 = arith.divf %361, %362 : vector<8x32xf32>
    %364 = vector.extract_strided_slice %345 {offsets = [0, 64], sizes = [8, 32], strides = [1, 1]} : vector<8x96xf32> to vector<8x32xf32>
    %365 = vector.extract_strided_slice %347 {offsets = [0, 64], sizes = [8, 32], strides = [1, 1]} : vector<8x96xf32> to vector<8x32xf32>
    %366 = arith.mulf %355, %365 : vector<8x32xf32>
    %367 = arith.addf %364, %366 : vector<8x32xf32>
    %368 = math.tanh %367 : vector<8x32xf32>
    %369 = arith.subf %341, %368 : vector<8x32xf32>
    %370 = arith.mulf %363, %369 : vector<8x32xf32>
    %371 = arith.addf %368, %370 : vector<8x32xf32>
    %c3_i32_88 = arith.constant 3 : i32
    %c8_i32_89 = arith.constant 8 : i32
    %372 = arith.muli %c3_i32_88, %c8_i32_89 : i32
    %373 = tpu.assume_multiple %372, 8 : i32
    %374 = arith.index_cast %373 : i32 to index
    %c0_90 = arith.constant 0 : index
    %375 = vector.load %arg10[%374, %c0_90] : memref<64x96xf32, #tpu.memory_space<vmem>>, vector<8x96xf32>
    %cst_91 = arith.constant dense<0.000000e+00> : vector<8x96xf32>
    %376 = tpu.matmul %371, %269, %cst_91 {dimension_numbers = #tpu.dot_dimension_numbers<[1], [0], [0], [1], [0, 0, 1, 1], [], []>} : vector<8x32xf32>, vector<32x96xf32>, vector<8x96xf32> -> vector<8x96xf32>
    %377 = arith.addf %376, %274 : vector<8x96xf32>
    %378 = vector.extract_strided_slice %375 {offsets = [0, 0], sizes = [8, 32], strides = [1, 1]} : vector<8x96xf32> to vector<8x32xf32>
    %379 = vector.extract_strided_slice %377 {offsets = [0, 0], sizes = [8, 32], strides = [1, 1]} : vector<8x96xf32> to vector<8x32xf32>
    %380 = arith.addf %378, %379 : vector<8x32xf32>
    %381 = arith.negf %380 : vector<8x32xf32>
    %382 = math.exp %381 : vector<8x32xf32>
    %cst_92 = arith.constant 1.000000e+00 : f32
    %383 = vector.broadcast %cst_92 : f32 to vector<8x32xf32>
    %384 = arith.addf %383, %382 : vector<8x32xf32>
    %385 = arith.divf %383, %384 : vector<8x32xf32>
    %386 = vector.extract_strided_slice %375 {offsets = [0, 32], sizes = [8, 32], strides = [1, 1]} : vector<8x96xf32> to vector<8x32xf32>
    %387 = vector.extract_strided_slice %377 {offsets = [0, 32], sizes = [8, 32], strides = [1, 1]} : vector<8x96xf32> to vector<8x32xf32>
    %388 = arith.addf %386, %387 : vector<8x32xf32>
    %389 = arith.negf %388 : vector<8x32xf32>
    %390 = math.exp %389 : vector<8x32xf32>
    %cst_93 = arith.constant 1.000000e+00 : f32
    %391 = vector.broadcast %cst_93 : f32 to vector<8x32xf32>
    %392 = arith.addf %391, %390 : vector<8x32xf32>
    %393 = arith.divf %391, %392 : vector<8x32xf32>
    %394 = vector.extract_strided_slice %375 {offsets = [0, 64], sizes = [8, 32], strides = [1, 1]} : vector<8x96xf32> to vector<8x32xf32>
    %395 = vector.extract_strided_slice %377 {offsets = [0, 64], sizes = [8, 32], strides = [1, 1]} : vector<8x96xf32> to vector<8x32xf32>
    %396 = arith.mulf %385, %395 : vector<8x32xf32>
    %397 = arith.addf %394, %396 : vector<8x32xf32>
    %398 = math.tanh %397 : vector<8x32xf32>
    %399 = arith.subf %371, %398 : vector<8x32xf32>
    %400 = arith.mulf %393, %399 : vector<8x32xf32>
    %401 = arith.addf %398, %400 : vector<8x32xf32>
    %c4_i32_94 = arith.constant 4 : i32
    %c8_i32_95 = arith.constant 8 : i32
    %402 = arith.muli %c4_i32_94, %c8_i32_95 : i32
    %403 = tpu.assume_multiple %402, 8 : i32
    %404 = arith.index_cast %403 : i32 to index
    %c0_96 = arith.constant 0 : index
    %405 = vector.load %arg10[%404, %c0_96] : memref<64x96xf32, #tpu.memory_space<vmem>>, vector<8x96xf32>
    %cst_97 = arith.constant dense<0.000000e+00> : vector<8x96xf32>
    %406 = tpu.matmul %401, %269, %cst_97 {dimension_numbers = #tpu.dot_dimension_numbers<[1], [0], [0], [1], [0, 0, 1, 1], [], []>} : vector<8x32xf32>, vector<32x96xf32>, vector<8x96xf32> -> vector<8x96xf32>
    %407 = arith.addf %406, %274 : vector<8x96xf32>
    %408 = vector.extract_strided_slice %405 {offsets = [0, 0], sizes = [8, 32], strides = [1, 1]} : vector<8x96xf32> to vector<8x32xf32>
    %409 = vector.extract_strided_slice %407 {offsets = [0, 0], sizes = [8, 32], strides = [1, 1]} : vector<8x96xf32> to vector<8x32xf32>
    %410 = arith.addf %408, %409 : vector<8x32xf32>
    %411 = arith.negf %410 : vector<8x32xf32>
    %412 = math.exp %411 : vector<8x32xf32>
    %cst_98 = arith.constant 1.000000e+00 : f32
    %413 = vector.broadcast %cst_98 : f32 to vector<8x32xf32>
    %414 = arith.addf %413, %412 : vector<8x32xf32>
    %415 = arith.divf %413, %414 : vector<8x32xf32>
    %416 = vector.extract_strided_slice %405 {offsets = [0, 32], sizes = [8, 32], strides = [1, 1]} : vector<8x96xf32> to vector<8x32xf32>
    %417 = vector.extract_strided_slice %407 {offsets = [0, 32], sizes = [8, 32], strides = [1, 1]} : vector<8x96xf32> to vector<8x32xf32>
    %418 = arith.addf %416, %417 : vector<8x32xf32>
    %419 = arith.negf %418 : vector<8x32xf32>
    %420 = math.exp %419 : vector<8x32xf32>
    %cst_99 = arith.constant 1.000000e+00 : f32
    %421 = vector.broadcast %cst_99 : f32 to vector<8x32xf32>
    %422 = arith.addf %421, %420 : vector<8x32xf32>
    %423 = arith.divf %421, %422 : vector<8x32xf32>
    %424 = vector.extract_strided_slice %405 {offsets = [0, 64], sizes = [8, 32], strides = [1, 1]} : vector<8x96xf32> to vector<8x32xf32>
    %425 = vector.extract_strided_slice %407 {offsets = [0, 64], sizes = [8, 32], strides = [1, 1]} : vector<8x96xf32> to vector<8x32xf32>
    %426 = arith.mulf %415, %425 : vector<8x32xf32>
    %427 = arith.addf %424, %426 : vector<8x32xf32>
    %428 = math.tanh %427 : vector<8x32xf32>
    %429 = arith.subf %401, %428 : vector<8x32xf32>
    %430 = arith.mulf %423, %429 : vector<8x32xf32>
    %431 = arith.addf %428, %430 : vector<8x32xf32>
    %c5_i32_100 = arith.constant 5 : i32
    %c8_i32_101 = arith.constant 8 : i32
    %432 = arith.muli %c5_i32_100, %c8_i32_101 : i32
    %433 = tpu.assume_multiple %432, 8 : i32
    %434 = arith.index_cast %433 : i32 to index
    %c0_102 = arith.constant 0 : index
    %435 = vector.load %arg10[%434, %c0_102] : memref<64x96xf32, #tpu.memory_space<vmem>>, vector<8x96xf32>
    %cst_103 = arith.constant dense<0.000000e+00> : vector<8x96xf32>
    %436 = tpu.matmul %431, %269, %cst_103 {dimension_numbers = #tpu.dot_dimension_numbers<[1], [0], [0], [1], [0, 0, 1, 1], [], []>} : vector<8x32xf32>, vector<32x96xf32>, vector<8x96xf32> -> vector<8x96xf32>
    %437 = arith.addf %436, %274 : vector<8x96xf32>
    %438 = vector.extract_strided_slice %435 {offsets = [0, 0], sizes = [8, 32], strides = [1, 1]} : vector<8x96xf32> to vector<8x32xf32>
    %439 = vector.extract_strided_slice %437 {offsets = [0, 0], sizes = [8, 32], strides = [1, 1]} : vector<8x96xf32> to vector<8x32xf32>
    %440 = arith.addf %438, %439 : vector<8x32xf32>
    %441 = arith.negf %440 : vector<8x32xf32>
    %442 = math.exp %441 : vector<8x32xf32>
    %cst_104 = arith.constant 1.000000e+00 : f32
    %443 = vector.broadcast %cst_104 : f32 to vector<8x32xf32>
    %444 = arith.addf %443, %442 : vector<8x32xf32>
    %445 = arith.divf %443, %444 : vector<8x32xf32>
    %446 = vector.extract_strided_slice %435 {offsets = [0, 32], sizes = [8, 32], strides = [1, 1]} : vector<8x96xf32> to vector<8x32xf32>
    %447 = vector.extract_strided_slice %437 {offsets = [0, 32], sizes = [8, 32], strides = [1, 1]} : vector<8x96xf32> to vector<8x32xf32>
    %448 = arith.addf %446, %447 : vector<8x32xf32>
    %449 = arith.negf %448 : vector<8x32xf32>
    %450 = math.exp %449 : vector<8x32xf32>
    %cst_105 = arith.constant 1.000000e+00 : f32
    %451 = vector.broadcast %cst_105 : f32 to vector<8x32xf32>
    %452 = arith.addf %451, %450 : vector<8x32xf32>
    %453 = arith.divf %451, %452 : vector<8x32xf32>
    %454 = vector.extract_strided_slice %435 {offsets = [0, 64], sizes = [8, 32], strides = [1, 1]} : vector<8x96xf32> to vector<8x32xf32>
    %455 = vector.extract_strided_slice %437 {offsets = [0, 64], sizes = [8, 32], strides = [1, 1]} : vector<8x96xf32> to vector<8x32xf32>
    %456 = arith.mulf %445, %455 : vector<8x32xf32>
    %457 = arith.addf %454, %456 : vector<8x32xf32>
    %458 = math.tanh %457 : vector<8x32xf32>
    %459 = arith.subf %431, %458 : vector<8x32xf32>
    %460 = arith.mulf %453, %459 : vector<8x32xf32>
    %461 = arith.addf %458, %460 : vector<8x32xf32>
    %c6_i32_106 = arith.constant 6 : i32
    %c8_i32_107 = arith.constant 8 : i32
    %462 = arith.muli %c6_i32_106, %c8_i32_107 : i32
    %463 = tpu.assume_multiple %462, 8 : i32
    %464 = arith.index_cast %463 : i32 to index
    %c0_108 = arith.constant 0 : index
    %465 = vector.load %arg10[%464, %c0_108] : memref<64x96xf32, #tpu.memory_space<vmem>>, vector<8x96xf32>
    %cst_109 = arith.constant dense<0.000000e+00> : vector<8x96xf32>
    %466 = tpu.matmul %461, %269, %cst_109 {dimension_numbers = #tpu.dot_dimension_numbers<[1], [0], [0], [1], [0, 0, 1, 1], [], []>} : vector<8x32xf32>, vector<32x96xf32>, vector<8x96xf32> -> vector<8x96xf32>
    %467 = arith.addf %466, %274 : vector<8x96xf32>
    %468 = vector.extract_strided_slice %465 {offsets = [0, 0], sizes = [8, 32], strides = [1, 1]} : vector<8x96xf32> to vector<8x32xf32>
    %469 = vector.extract_strided_slice %467 {offsets = [0, 0], sizes = [8, 32], strides = [1, 1]} : vector<8x96xf32> to vector<8x32xf32>
    %470 = arith.addf %468, %469 : vector<8x32xf32>
    %471 = arith.negf %470 : vector<8x32xf32>
    %472 = math.exp %471 : vector<8x32xf32>
    %cst_110 = arith.constant 1.000000e+00 : f32
    %473 = vector.broadcast %cst_110 : f32 to vector<8x32xf32>
    %474 = arith.addf %473, %472 : vector<8x32xf32>
    %475 = arith.divf %473, %474 : vector<8x32xf32>
    %476 = vector.extract_strided_slice %465 {offsets = [0, 32], sizes = [8, 32], strides = [1, 1]} : vector<8x96xf32> to vector<8x32xf32>
    %477 = vector.extract_strided_slice %467 {offsets = [0, 32], sizes = [8, 32], strides = [1, 1]} : vector<8x96xf32> to vector<8x32xf32>
    %478 = arith.addf %476, %477 : vector<8x32xf32>
    %479 = arith.negf %478 : vector<8x32xf32>
    %480 = math.exp %479 : vector<8x32xf32>
    %cst_111 = arith.constant 1.000000e+00 : f32
    %481 = vector.broadcast %cst_111 : f32 to vector<8x32xf32>
    %482 = arith.addf %481, %480 : vector<8x32xf32>
    %483 = arith.divf %481, %482 : vector<8x32xf32>
    %484 = vector.extract_strided_slice %465 {offsets = [0, 64], sizes = [8, 32], strides = [1, 1]} : vector<8x96xf32> to vector<8x32xf32>
    %485 = vector.extract_strided_slice %467 {offsets = [0, 64], sizes = [8, 32], strides = [1, 1]} : vector<8x96xf32> to vector<8x32xf32>
    %486 = arith.mulf %475, %485 : vector<8x32xf32>
    %487 = arith.addf %484, %486 : vector<8x32xf32>
    %488 = math.tanh %487 : vector<8x32xf32>
    %489 = arith.subf %461, %488 : vector<8x32xf32>
    %490 = arith.mulf %483, %489 : vector<8x32xf32>
    %491 = arith.addf %488, %490 : vector<8x32xf32>
    %c7_i32_112 = arith.constant 7 : i32
    %c8_i32_113 = arith.constant 8 : i32
    %492 = arith.muli %c7_i32_112, %c8_i32_113 : i32
    %493 = tpu.assume_multiple %492, 8 : i32
    %494 = arith.index_cast %493 : i32 to index
    %c0_114 = arith.constant 0 : index
    %495 = vector.load %arg10[%494, %c0_114] : memref<64x96xf32, #tpu.memory_space<vmem>>, vector<8x96xf32>
    %cst_115 = arith.constant dense<0.000000e+00> : vector<8x96xf32>
    %496 = tpu.matmul %491, %269, %cst_115 {dimension_numbers = #tpu.dot_dimension_numbers<[1], [0], [0], [1], [0, 0, 1, 1], [], []>} : vector<8x32xf32>, vector<32x96xf32>, vector<8x96xf32> -> vector<8x96xf32>
    %497 = arith.addf %496, %274 : vector<8x96xf32>
    %498 = vector.extract_strided_slice %495 {offsets = [0, 0], sizes = [8, 32], strides = [1, 1]} : vector<8x96xf32> to vector<8x32xf32>
    %499 = vector.extract_strided_slice %497 {offsets = [0, 0], sizes = [8, 32], strides = [1, 1]} : vector<8x96xf32> to vector<8x32xf32>
    %500 = arith.addf %498, %499 : vector<8x32xf32>
    %501 = arith.negf %500 : vector<8x32xf32>
    %502 = math.exp %501 : vector<8x32xf32>
    %cst_116 = arith.constant 1.000000e+00 : f32
    %503 = vector.broadcast %cst_116 : f32 to vector<8x32xf32>
    %504 = arith.addf %503, %502 : vector<8x32xf32>
    %505 = arith.divf %503, %504 : vector<8x32xf32>
    %506 = vector.extract_strided_slice %495 {offsets = [0, 32], sizes = [8, 32], strides = [1, 1]} : vector<8x96xf32> to vector<8x32xf32>
    %507 = vector.extract_strided_slice %497 {offsets = [0, 32], sizes = [8, 32], strides = [1, 1]} : vector<8x96xf32> to vector<8x32xf32>
    %508 = arith.addf %506, %507 : vector<8x32xf32>
    %509 = arith.negf %508 : vector<8x32xf32>
    %510 = math.exp %509 : vector<8x32xf32>
    %cst_117 = arith.constant 1.000000e+00 : f32
    %511 = vector.broadcast %cst_117 : f32 to vector<8x32xf32>
    %512 = arith.addf %511, %510 : vector<8x32xf32>
    %513 = arith.divf %511, %512 : vector<8x32xf32>
    %514 = vector.extract_strided_slice %495 {offsets = [0, 64], sizes = [8, 32], strides = [1, 1]} : vector<8x96xf32> to vector<8x32xf32>
    %515 = vector.extract_strided_slice %497 {offsets = [0, 64], sizes = [8, 32], strides = [1, 1]} : vector<8x96xf32> to vector<8x32xf32>
    %516 = arith.mulf %505, %515 : vector<8x32xf32>
    %517 = arith.addf %514, %516 : vector<8x32xf32>
    %518 = math.tanh %517 : vector<8x32xf32>
    %519 = arith.subf %491, %518 : vector<8x32xf32>
    %520 = arith.mulf %513, %519 : vector<8x32xf32>
    %521 = arith.addf %518, %520 : vector<8x32xf32>
    %c8_i32_118 = arith.constant 8 : i32
    %c0_119 = arith.constant 0 : index
    %c0_120 = arith.constant 0 : index
    %522 = vector.load %arg7[%c0_119, %c0_120] : memref<32x4xf32, #tpu.memory_space<vmem>>, vector<32x4xf32>
    %cst_121 = arith.constant dense<0.000000e+00> : vector<8x4xf32>
    %523 = tpu.matmul %521, %522, %cst_121 {dimension_numbers = #tpu.dot_dimension_numbers<[1], [0], [0], [1], [0, 0, 1, 1], [], []>} : vector<8x32xf32>, vector<32x4xf32>, vector<8x4xf32> -> vector<8x4xf32>
    %c0_122 = arith.constant 0 : index
    %c0_123 = arith.constant 0 : index
    %524 = vector.load %arg8[%c0_122, %c0_123] : memref<1x4xf32, #tpu.memory_space<vmem>>, vector<1x4xf32>
    %525 = vector.broadcast %524 : vector<1x4xf32> to vector<8x4xf32>
    %526 = arith.addf %523, %525 : vector<8x4xf32>
    %c0_124 = arith.constant 0 : index
    %c0_125 = arith.constant 0 : index
    %527 = vector.load %arg9[%c0_124, %c0_125] : memref<8x4xf32, #tpu.memory_space<vmem>>, vector<8x4xf32>
    tpu.vector_store %arg9[%c0_124, %c0_125], %526 {strides = array<i32>} : memref<8x4xf32, #tpu.memory_space<vmem>>, vector<8x4xf32>,
    return
  }
}

</mosaic_0001>

<bundles_post_ra>
// kernel: my_gru_net_pallas.1
= control target key start
LH: loop header
LB: loop body
LE: loop exit
PB: predicated region body
PF: predicated region fallthrough
CT: control target
= control target key end

     0   :  { %vm73_vm0 = vcmask 1043456   ;;  %vm48_vm1 = vcmask 31744   ;;  %v1521_v6 = vmov 0.0   ;;  %vm118_vm2 = vcmask 785408   ;;  %s1522_s21 = smov 64   ;;  %s1524_s22 = smov 32   ;;  %s1935_s1 = inlined_call_operand.vmem [shape: f32[4,96], index: 1, kind: input, shape index: {}]   ;;  %s1936_s2 = inlined_call_operand.vmem [shape: f32[32,96], index: 2, kind: input, shape index: {}]   ;;  %s1937_s0 = inlined_call_operand.vmem [shape: f32[64,4], index: 0, kind: input, shape index: {}]   ;;  %s1938_s3 = inlined_call_operand.vmem [shape: f32[2,96], index: 3, kind: input, shape index: {}]   ;;  %s1939_s4 = inlined_call_operand.vmem [shape: f32[32,96], index: 4, kind: input, shape index: {}]   ;;  %s1940_s6 = inlined_call_operand.vmem [shape: f32[2,96], index: 6, kind: input, shape index: {}]   ;;  %s1941_s5 = inlined_call_operand.vmem [shape: f32[32,96], index: 5, kind: input, shape index: {}]   ;;  %s1942_s7 = inlined_call_operand.vmem [shape: f32[32,4], index: 7, kind: input, shape index: {}]   ;;  %s1943_s8 = inlined_call_operand.vmem [shape: f32[1,4], index: 8, kind: input, shape index: {}]   ;;  %s1944_s9 = inlined_call_operand.vmem [shape: f32[8,4], index: 9, kind: output, shape index: {}]  }
   0x1   :  { %v46_v0 = vld [vmem:[%s1935_s1] sm:$0xf]  ;;  %v1581_v1 = vld [vmem:[%s1936_s2 + $0x18] sm:$0xff]  ;;  %v1590_v3 = vld [vmem:[%s1936_s2 + $0x10] sm:$0xff]  ;;  %vm128_vm7 = vcmask 261120  }
   0x2   :  { %v38_v2 = vld [vmem:[%s1937_s0] sm:$0xff]  ;;  %1372 = vmatpush.msk.msra.mxu0 %vm73_vm0, %v46_v0  ;;  %144 = vmatpush.msra.mxu1 %v1581_v1  ;;  %v1596_v4 = vld [vmem:[%s1936_s2 + $0x8] sm:$0xff]  ;;  %v720_v40 = vld [vmem:[%s1939_s4 + $0x18] sm:$0xff] }
   0x3   :  { %1373 = vmatmul.msk.f32.vlgmr.msra.gmra.mxu0 %vm48_vm1, %v38_v2  ;;  %215 = vmatpush.msra.mxu2 %v1581_v1  ;;  %v1604_v5 = vld [vmem:[%s1936_s2] sm:$0xff]  ;;  %v39_v37 = vld [vmem:[%s1937_s0 + $0x8] sm:$0xff]  ;;  %v719_v41 = vld [vmem:[%s1939_s4 + $0x10] sm:$0xff] }
   0x4   :  { %145 = vmatpush.msra.mxu1 %v1590_v3  ;;  %503 = vmatpush.msrb.mxu0 %v1581_v1  ;;  %v36_v7 = vld [vmem:[%s1938_s3] sm:$0x3]  ;;  %s1523_s3 = smov 96   ;;  %v718_v42 = vld [vmem:[%s1939_s4 + $0x8] sm:$0xff] }
   0x5   :  { %216 = vmatpush.msra.mxu2 %v1590_v3  ;;  %v1630_v8 = vperm.slane %v36_v7, 0  ;;  %v1634_v11 = vperm.slane %v36_v7, 1  ;;  %758 = vmatpush.msra.mxu3 %v720_v40  ;;  %v717_v43 = vld [vmem:[%s1939_s4] sm:$0xff] }
   0x6   :  { %146 = vmatpush.msra.mxu1 %v1596_v4  ;;  %504 = vmatpush.msrb.mxu0 %v1590_v3  ;;  %v1671_v50 = vld [vmem:[%s1940_s6] sm:$0x3] }
   0x7   :  { %217 = vmatpush.msra.mxu2 %v1596_v4  ;;  %759 = vmatpush.msra.mxu3 %v719_v41  ;;  %v1675_v51 = vperm.slane %v1671_v50, 0 }
   0x8   :  { %147 = vmatpush.msra.mxu1 %v1604_v5  ;;  %505 = vmatpush.msrb.mxu0 %v1596_v4 }
   0x9   :  { %148 = vmatmul.f32.vlgmr.msra.gmra.mxu1 %v1521_v6  ;;  %218 = vmatpush.msra.mxu2 %v1604_v5 }
   0xa   :  { %359 = vmatpush.msrb.mxu1 %v1581_v1  ;;  %506 = vmatpush.msrb.mxu0 %v1604_v5 }
   0xb   :  { %287 = vmatpush.msrb.mxu2 %v1581_v1  ;;  %1374 = vmatmul.msk.f32.gmra.mxu0 %vm48_vm1, %v39_v37 }
   0xc   :  { %360 = vmatpush.msrb.mxu1 %v1590_v3  ;;  %760 = vmatpush.msra.mxu3 %v718_v42 }
   0xd   :  { %288 = vmatpush.msrb.mxu2 %v1590_v3 }
   0xe   :  { %361 = vmatpush.msrb.mxu1 %v1596_v4  ;;  %761 = vmatpush.msra.mxu3 %v717_v43 }
   0xf   :  { %289 = vmatpush.msrb.mxu2 %v1596_v4 }
  0x10   :  { %362 = vmatpush.msrb.mxu1 %v1604_v5 }
  0x11   :  { %290 = vmatpush.msrb.mxu2 %v1604_v5 }
  0x12   :  { %575 = vmatpush.msra.mxu1 %v1581_v1 }
  0x14   :  { %576 = vmatpush.msra.mxu1 %v1590_v3 }
  0x16   :  { %577 = vmatpush.msra.mxu1 %v1596_v4 }
  0x18   :  { %578 = vmatpush.msra.mxu1 %v1604_v5 }
  0x80   :  { %v94_v9 = vpop.f32.mrf.mxu0 }
  0x81   :  { %v95_v10 = vadd.f32 %v94_v9, %v1630_v8 }
  0x83   :  { %119 = vst.msk [vmem:[#allocation2] sm:$0xff] %vm118_vm2, %v95_v10 }
  0x86   :  { %v149_v12 = vpop.f32.mrf.mxu1 }
  0x87   :  { %v150_v13 = vadd.f32 %v149_v12, %v1634_v11 }
  0x88   :  { %v97_v45 = vpop.f32.mrf.mxu0 }
  0x89   :  { %173 = vrot.lane.b32.xlu0 %v150_v13, %s1522_s21  ;;  %v98_v46 = vadd.f32 %v97_v45, %v1630_v8 }
  0x8a   :  { %v127_v14 = vld [vmem:[#allocation2] sm:$0xff] }
  0x8b   :  { %v152_v15 = vadd.f32 %v150_v13, %v127_v14  ;;  %120 = vst.msk [vmem:[#allocation2 + $0x8] sm:$0xff] %vm118_vm2, %v98_v46 }
  0x8d   :  { %v1381_v16 = vmul.f32 -1.442695, %v152_v15 }
  0x8f   :  { %1425 = vpow2.f32 %v1381_v16 }
  0x92   :  { %v200_v54 = vld [vmem:[#allocation2 + $0x8] sm:$0xff] }
  0x95   :  { %v1426_v17 = vpop.eup %1425 }
  0x96   :  { %v156_v18 = vadd.f32 1.0, %v1426_v17 }
  0x98   :  { %1427 = vrcp.f32 %v156_v18  ;;  %v168_v24 = vand.u32 2147483648, %v156_v18  ;;  %vm162_vm4 = vweird.f32 %v156_v18  ;;  %v166_v25 = vand.u32 2147483647, %v156_v18 }
  0x9a   :  { %v169_v27 = vor.u32 1.1754944e-38, %v168_v24  ;;  %vm167_vm6 = vcmp.eq.f32.partialorder %v166_v25, 8.507059e+37 }
  0x9e   :  { %v1428_v19 = vpop.eup %1427 }
  0x9f   :  { %v158_v20 = vmul.f32 %v1428_v19, %v156_v18  ;;  %vm163_vm3 = vweird.f32 %v1428_v19 }
  0xa0   :  { %vm164_vm5 = vmor %vm162_vm4, %vm163_vm3 }
  0xa1   :  { %v159_v21 = vsub.f32 1.0, %v158_v20  ;;  %v40_v20 = vld [vmem:[%s1937_s0 + $0x10] sm:$0xff] }
  0xa2   :  { %1375 = vmatmul.msk.f32.gmra.mxu0 %vm48_vm1, %v40_v20 }
  0xa3   :  { %v160_v22 = vmul.f32 %v1428_v19, %v159_v21 }
  0xa5   :  { %v161_v23 = vadd.f32 %v1428_v19, %v160_v22 }
  0xa7   :  { %v165_v26 = vsel %vm164_vm5, %v1428_v19, %v161_v23 }
  0xa8   :  { %v170_v29 = vsel %vm167_vm6, %v169_v27, %v165_v26 }
  0xfb   :  { %v174_v28 = vpop.permute.xlu0 %173 }
  0xfc   :  { %v176_v30 = vmul.f32 %v174_v28, %v170_v29 }
  0xfe   :  { %178 = vrot.lane.b32.xlu0 %v176_v30, %s1522_s21 }
 0x11f   :  { %v100_v23 = vpop.f32.mrf.mxu0 }
 0x120   :  { %v101_v24 = vadd.f32 %v100_v23, %v1630_v8 }
 0x122   :  { %121 = vst.msk [vmem:[#allocation2 + $0x10] sm:$0xff] %vm118_vm2, %v101_v24 }
 0x170   :  { %v179_v31 = vpop.permute.xlu0 %178 }
 0x171   :  { %v181_v32 = vadd.f32 %v179_v31, %v127_v14 }
 0x173   :  { %1429 = vtanh.f32 %v181_v32 }
 0x179   :  { %v1430_v33 = vpop.eup %1429 }
 0x17a   :  { %v183_v34 = vsub.f32 0.0, %v1430_v33 }
 0x17c   :  { %185 = vrot.lane.b32.xlu1 %v183_v34, %s1523_s3 }
 0x1ee   :  { %v186_v35 = vpop.permute.xlu1 %185 }
 0x1ef   :  { %v188_v36 = vmul.f32 %v186_v35, %v170_v29 }
 0x1f1   :  { %190 = vrot.lane.b32.xlu1 %v188_v36, %s1524_s22 }
 0x263   :  { %v191_v38 = vpop.permute.xlu1 %190 }
 0x264   :  { %v193_v39 = vadd.f32 %v1430_v33, %v191_v38 }
 0x266   :  { %195 = vrot.lane.b32.xlu2 %v193_v39, %s1522_s21 }
 0x2c0   :  { %v196_v44 = vpop.permute.xlu2 %195 }
 0x2c1   :  { %198 = vst.msk [vmem:[#allocation3] sm:$0xff] %vm128_vm7, %v196_v44  ;;  %1382 = vmatmul.msk.f32.vlgmr.msra.gmra.mxu2 %vm128_vm7, %v196_v44 }
 0x2c2   :  { %431 = vmatpush.msra.mxu2 %v1581_v1 }
 0x2c4   :  { %432 = vmatpush.msra.mxu2 %v1590_v3 }
 0x2c6   :  { %433 = vmatpush.msra.mxu2 %v1596_v4 }
 0x2c8   :  { %v709_v47 = vld [vmem:[#allocation3] sm:$0xff]  ;;  %434 = vmatpush.msra.mxu2 %v1604_v5 }
 0x2c9   :  { %1396 = vmatmul.msk.f32.vlgmr.msra.gmra.mxu3 %vm128_vm7, %v709_v47 }
 0x344   :  { %v220_v48 = vpop.f32.mrf.mxu2 }
 0x345   :  { %v221_v49 = vadd.f32 %v220_v48, %v1634_v11 }
 0x347   :  { %244 = vrot.lane.b32.xlu2 %v221_v49, %s1522_s21  ;;  %v223_v55 = vadd.f32 %v221_v49, %v200_v54 }
 0x349   :  { %v1383_v56 = vmul.f32 -1.442695, %v223_v55 }
 0x34b   :  { %1431 = vpow2.f32 %v1383_v56 }
 0x34c   :  { %v763_v52 = vpop.f32.mrf.mxu3 }
 0x34d   :  { %v764_v53 = vadd.f32 %v763_v52, %v1675_v51  ;;  %v41_v52 = vld [vmem:[%s1937_s0 + $0x18] sm:$0xff] }
 0x34e   :  { %1376 = vmatmul.msk.f32.gmra.mxu0 %vm48_vm1, %v41_v52 }
 0x34f   :  { %787 = vst.msk [vmem:[#allocation2] sm:$0xff] %vm118_vm2, %v764_v53 }
 0x351   :  { %v1432_v57 = vpop.eup %1431 }
 0x352   :  { %v227_v58 = vadd.f32 1.0, %v1432_v57 }
 0x354   :  { %1433 = vrcp.f32 %v227_v58  ;;  %v239_v0 = vand.u32 2147483648, %v227_v58  ;;  %vm233_vm9 = vweird.f32 %v227_v58  ;;  %v237_v2 = vand.u32 2147483647, %v227_v58 }
 0x356   :  { %v240_v9 = vor.u32 1.1754944e-38, %v239_v0  ;;  %vm238_vm11 = vcmp.eq.f32.partialorder %v237_v2, 8.507059e+37 }
 0x35a   :  { %v1434_v59 = vpop.eup %1433 }
 0x35b   :  { %v229_v60 = vmul.f32 %v1434_v59, %v227_v58  ;;  %vm234_vm8 = vweird.f32 %v1434_v59 }
 0x35c   :  { %vm235_vm10 = vmor %vm233_vm9, %vm234_vm8 }
 0x35d   :  { %v230_v61 = vsub.f32 1.0, %v229_v60 }
 0x35f   :  { %v231_v62 = vmul.f32 %v1434_v59, %v230_v61 }
 0x361   :  { %v232_v63 = vadd.f32 %v1434_v59, %v231_v62 }
 0x363   :  { %v236_v7 = vsel %vm235_vm10, %v1434_v59, %v232_v63 }
 0x364   :  { %v241_v12 = vsel %vm238_vm11, %v240_v9, %v236_v7 }
 0x3a1   :  { %v245_v10 = vpop.permute.xlu2 %244 }
 0x3a2   :  { %v247_v13 = vmul.f32 %v245_v10, %v241_v12 }
 0x3a4   :  { %249 = vrot.lane.b32.xlu0 %v247_v13, %s1522_s21 }
 0x3cb   :  { %v103_v56 = vpop.f32.mrf.mxu0 }
 0x3cc   :  { %v104_v57 = vadd.f32 %v103_v56, %v1630_v8 }
 0x3ce   :  { %122 = vst.msk [vmem:[#allocation2 + $0x18] sm:$0xff] %vm118_vm2, %v104_v57 }
 0x3d5   :  { %v344_v63 = vld [vmem:[#allocation2 + $0x18] sm:$0xff] }
 0x416   :  { %v250_v14 = vpop.permute.xlu0 %249 }
 0x417   :  { %v252_v15 = vadd.f32 %v250_v14, %v200_v54 }
 0x419   :  { %1435 = vtanh.f32 %v252_v15 }
 0x41f   :  { %v1436_v16 = vpop.eup %1435 }
 0x420   :  { %v254_v17 = vsub.f32 %v193_v39, %v1436_v16 }
 0x422   :  { %256 = vrot.lane.b32.xlu1 %v254_v17, %s1523_s3 }
 0x494   :  { %v257_v18 = vpop.permute.xlu1 %256 }
 0x495   :  { %v259_v19 = vmul.f32 %v257_v18, %v241_v12 }
 0x497   :  { %261 = vrot.lane.b32.xlu2 %v259_v19, %s1524_s22 }
 0x4f1   :  { %v262_v21 = vpop.permute.xlu2 %261 }
 0x4f2   :  { %v264_v22 = vadd.f32 %v1436_v16, %v262_v21 }
 0x4f4   :  { %266 = vrot.lane.b32.xlu0 %v264_v22, %s1522_s21 }
 0x566   :  { %v267_v25 = vpop.permute.xlu0 %266 }
 0x567   :  { %270 = vst.msk [vmem:[#allocation3 + $0x8] sm:$0xff] %vm128_vm7, %v267_v25  ;;  %1384 = vmatmul.msk.f32.vlgmr.msrb.gmra.mxu2 %vm128_vm7, %v267_v25 }
 0x568   :  { %647 = vmatpush.msrb.mxu2 %v1581_v1  ;;  %v272_v1 = vld [vmem:[#allocation2 + $0x10] sm:$0xff] }
 0x56a   :  { %648 = vmatpush.msrb.mxu2 %v1590_v3 }
 0x56c   :  { %649 = vmatpush.msrb.mxu2 %v1596_v4 }
 0x56e   :  { %v710_v26 = vld [vmem:[#allocation3 + $0x8] sm:$0xff]  ;;  %650 = vmatpush.msrb.mxu2 %v1604_v5 }
 0x56f   :  { %1397 = vmatmul.msk.f32.gmra.mxu3 %vm128_vm7, %v710_v26 }
 0x5ea   :  { %v292_v27 = vpop.f32.mrf.mxu2 }
 0x5eb   :  { %v293_v28 = vadd.f32 %v292_v27, %v1634_v11 }
 0x5ed   :  { %316 = vrot.lane.b32.xlu1 %v293_v28, %s1522_s21  ;;  %v295_v31 = vadd.f32 %v293_v28, %v272_v1 }
 0x5ef   :  { %v1385_v3 = vmul.f32 -1.442695, %v295_v31 }
 0x5f1   :  { %1437 = vpow2.f32 %v1385_v3 }
 0x5f2   :  { %v766_v29 = vpop.f32.mrf.mxu3 }
 0x5f3   :  { %v767_v30 = vadd.f32 %v766_v29, %v1675_v51  ;;  %v42_v29 = vld [vmem:[%s1937_s0 + $0x20] sm:$0xff] }
 0x5f4   :  { %1377 = vmatmul.msk.f32.gmra.mxu0 %vm48_vm1, %v42_v29 }
 0x5f5   :  { %788 = vst.msk [vmem:[#allocation2 + $0x8] sm:$0xff] %vm118_vm2, %v767_v30 }
 0x5f7   :  { %v1438_v4 = vpop.eup %1437 }
 0x5f8   :  { %v299_v32 = vadd.f32 1.0, %v1438_v4 }
 0x5fa   :  { %1439 = vrcp.f32 %v299_v32  ;;  %v311_v37 = vand.u32 2147483648, %v299_v32  ;;  %vm305_vm13 = vweird.f32 %v299_v32  ;;  %v309_v38 = vand.u32 2147483647, %v299_v32 }
 0x5fc   :  { %v312_v40 = vor.u32 1.1754944e-38, %v311_v37  ;;  %vm310_vm15 = vcmp.eq.f32.partialorder %v309_v38, 8.507059e+37 }
 0x600   :  { %v1440_v5 = vpop.eup %1439 }
 0x601   :  { %v301_v33 = vmul.f32 %v1440_v5, %v299_v32  ;;  %vm306_vm12 = vweird.f32 %v1440_v5 }
 0x602   :  { %vm307_vm14 = vmor %vm305_vm13, %vm306_vm12 }
 0x603   :  { %v302_v34 = vsub.f32 1.0, %v301_v33 }
 0x605   :  { %v303_v35 = vmul.f32 %v1440_v5, %v302_v34 }
 0x607   :  { %v304_v36 = vadd.f32 %v1440_v5, %v303_v35 }
 0x609   :  { %v308_v39 = vsel %vm307_vm14, %v1440_v5, %v304_v36 }
 0x60a   :  { %v313_v42 = vsel %vm310_vm15, %v312_v40, %v308_v39 }
 0x65f   :  { %v317_v41 = vpop.permute.xlu1 %316 }
 0x660   :  { %v319_v43 = vmul.f32 %v317_v41, %v313_v42 }
 0x662   :  { %321 = vrot.lane.b32.xlu2 %v319_v43, %s1522_s21 }
 0x671   :  { %v106_v31 = vpop.f32.mrf.mxu0 }
 0x672   :  { %v107_v3 = vadd.f32 %v106_v31, %v1630_v8 }
 0x674   :  { %123 = vst.msk [vmem:[#allocation2 + $0x20] sm:$0xff] %vm118_vm2, %v107_v3 }
 0x67b   :  { %v416_v36 = vld [vmem:[#allocation2 + $0x20] sm:$0xff] }
 0x6bc   :  { %v322_v44 = vpop.permute.xlu2 %321 }
 0x6bd   :  { %v324_v45 = vadd.f32 %v322_v44, %v272_v1 }
 0x6bf   :  { %1441 = vtanh.f32 %v324_v45 }
 0x6c5   :  { %v1442_v46 = vpop.eup %1441 }
 0x6c6   :  { %v326_v47 = vsub.f32 %v264_v22, %v1442_v46 }
 0x6c8   :  { %328 = vrot.lane.b32.xlu0 %v326_v47, %s1523_s3 }
 0x73a   :  { %v329_v48 = vpop.permute.xlu0 %328 }
 0x73b   :  { %v331_v49 = vmul.f32 %v329_v48, %v313_v42 }
 0x73d   :  { %333 = vrot.lane.b32.xlu1 %v331_v49, %s1524_s22 }
 0x7af   :  { %v334_v53 = vpop.permute.xlu1 %333 }
 0x7b0   :  { %v336_v54 = vadd.f32 %v1442_v46, %v334_v53 }
 0x7b2   :  { %338 = vrot.lane.b32.xlu2 %v336_v54, %s1522_s21 }
 0x80c   :  { %v339_v55 = vpop.permute.xlu2 %338 }
 0x80d   :  { %342 = vst.msk [vmem:[#allocation3 + $0x10] sm:$0xff] %vm128_vm7, %v339_v55  ;;  %1386 = vmatmul.msk.f32.vlgmr.msrb.gmra.mxu1 %vm128_vm7, %v339_v55 }
 0x814   :  { %v711_v58 = vld [vmem:[#allocation3 + $0x10] sm:$0xff] }
 0x815   :  { %1398 = vmatmul.msk.f32.gmra.mxu3 %vm128_vm7, %v711_v58 }
 0x88a   :  { %v364_v59 = vpop.f32.mrf.mxu1 }
 0x88b   :  { %v365_v60 = vadd.f32 %v364_v59, %v1634_v11 }
 0x88d   :  { %388 = vrot.lane.b32.xlu0 %v365_v60, %s1522_s21  ;;  %v367_v0 = vadd.f32 %v365_v60, %v344_v63 }
 0x88f   :  { %v1387_v2 = vmul.f32 -1.442695, %v367_v0 }
 0x891   :  { %1443 = vpow2.f32 %v1387_v2 }
 0x897   :  { %v1444_v7 = vpop.eup %1443 }
 0x898   :  { %v769_v61 = vpop.f32.mrf.mxu3  ;;  %v371_v9 = vadd.f32 1.0, %v1444_v7 }
 0x899   :  { %v770_v62 = vadd.f32 %v769_v61, %v1675_v51  ;;  %v43_v61 = vld [vmem:[%s1937_s0 + $0x28] sm:$0xff] }
 0x89a   :  { %1445 = vrcp.f32 %v371_v9  ;;  %v383_v16 = vand.u32 2147483648, %v371_v9  ;;  %vm377_vm3 = vweird.f32 %v371_v9  ;;  %v381_v17 = vand.u32 2147483647, %v371_v9  ;;  %1378 = vmatmul.msk.f32.gmra.mxu0 %vm48_vm1, %v43_v61 }
 0x89b   :  { %789 = vst.msk [vmem:[#allocation2 + $0x10] sm:$0xff] %vm118_vm2, %v770_v62  ;;  %v44_v62 = vld [vmem:[%s1937_s0 + $0x30] sm:$0xff] }
 0x89c   :  { %v384_v19 = vor.u32 1.1754944e-38, %v383_v16  ;;  %vm382_vm5 = vcmp.eq.f32.partialorder %v381_v17, 8.507059e+37 }
 0x8a0   :  { %v1446_v10 = vpop.eup %1445 }
 0x8a1   :  { %v373_v12 = vmul.f32 %v1446_v10, %v371_v9  ;;  %vm378_vm0 = vweird.f32 %v1446_v10 }
 0x8a2   :  { %vm379_vm4 = vmor %vm377_vm3, %vm378_vm0  ;;  %1379 = vmatmul.msk.f32.gmra.mxu0 %vm48_vm1, %v44_v62 }
 0x8a3   :  { %v374_v13 = vsub.f32 1.0, %v373_v12 }
 0x8a5   :  { %v375_v14 = vmul.f32 %v1446_v10, %v374_v13 }
 0x8a7   :  { %v376_v15 = vadd.f32 %v1446_v10, %v375_v14 }
 0x8a9   :  { %v380_v18 = vsel %vm379_vm4, %v1446_v10, %v376_v15 }
 0x8aa   :  { %v385_v21 = vsel %vm382_vm5, %v384_v19, %v380_v18 }
 0x8ff   :  { %v389_v20 = vpop.permute.xlu0 %388 }
 0x900   :  { %v391_v22 = vmul.f32 %v389_v20, %v385_v21 }
 0x902   :  { %393 = vrot.lane.b32.xlu1 %v391_v22, %s1522_s21 }
 0x917   :  { %v109_v7 = vpop.f32.mrf.mxu0 }
 0x918   :  { %v110_v9 = vadd.f32 %v109_v7, %v1630_v8 }
 0x91a   :  { %124 = vst.msk [vmem:[#allocation2 + $0x28] sm:$0xff] %vm118_vm2, %v110_v9 }
 0x91f   :  { %v112_v10 = vpop.f32.mrf.mxu0 }
 0x920   :  { %v113_v12 = vadd.f32 %v112_v10, %v1630_v8 }
 0x922   :  { %125 = vst.msk [vmem:[#allocation2 + $0x30] sm:$0xff] %vm118_vm2, %v113_v12 }
 0x974   :  { %v394_v23 = vpop.permute.xlu1 %393 }
 0x975   :  { %v396_v24 = vadd.f32 %v394_v23, %v344_v63  ;;  %v45_v63 = vld [vmem:[%s1937_s0 + $0x38] sm:$0xff] }
 0x976   :  { %1380 = vmatmul.msk.f32.gmra.mxu0 %vm48_vm1, %v45_v63 }
 0x977   :  { %1447 = vtanh.f32 %v396_v24 }
 0x97d   :  { %v1448_v25 = vpop.eup %1447 }
 0x97e   :  { %v398_v26 = vsub.f32 %v336_v54, %v1448_v25 }
 0x980   :  { %400 = vrot.lane.b32.xlu2 %v398_v26, %s1523_s3 }
 0x9da   :  { %v401_v27 = vpop.permute.xlu2 %400 }
 0x9db   :  { %v403_v28 = vmul.f32 %v401_v27, %v385_v21 }
 0x9dd   :  { %405 = vrot.lane.b32.xlu0 %v403_v28, %s1524_s22 }
 0x9f3   :  { %v115_v13 = vpop.f32.mrf.mxu0 }
 0x9f4   :  { %v116_v14 = vadd.f32 %v115_v13, %v1630_v8  ;;  %v488_v8 = vld [vmem:[#allocation2 + $0x28] sm:$0xff] }
 0x9f6   :  { %126 = vst.msk [vmem:[#allocation2 + $0x38] sm:$0xff] %vm118_vm2, %v116_v14 }
 0xa4f   :  { %v406_v30 = vpop.permute.xlu0 %405 }
 0xa50   :  { %v408_v1 = vadd.f32 %v1448_v25, %v406_v30 }
 0xa52   :  { %410 = vrot.lane.b32.xlu1 %v408_v1, %s1522_s21 }
 0xac4   :  { %v411_v4 = vpop.permute.xlu1 %410 }
 0xac5   :  { %414 = vst.msk [vmem:[#allocation3 + $0x18] sm:$0xff] %vm128_vm7, %v411_v4  ;;  %1388 = vmatmul.msk.f32.vlgmr.msra.gmra.mxu2 %vm128_vm7, %v411_v4 }
 0xacc   :  { %v712_v32 = vld [vmem:[#allocation3 + $0x18] sm:$0xff] }
 0xacd   :  { %1399 = vmatmul.msk.f32.gmra.mxu3 %vm128_vm7, %v712_v32 }
 0xb48   :  { %v436_v5 = vpop.f32.mrf.mxu2 }
 0xb49   :  { %v437_v33 = vadd.f32 %v436_v5, %v1634_v11 }
 0xb4b   :  { %460 = vrot.lane.b32.xlu2 %v437_v33, %s1522_s21  ;;  %v439_v37 = vadd.f32 %v437_v33, %v416_v36 }
 0xb4d   :  { %v1389_v38 = vmul.f32 -1.442695, %v439_v37 }
 0xb4f   :  { %1449 = vpow2.f32 %v1389_v38 }
 0xb50   :  { %v772_v34 = vpop.f32.mrf.mxu3 }
 0xb51   :  { %v773_v35 = vadd.f32 %v772_v34, %v1675_v51 }
 0xb53   :  { %790 = vst.msk [vmem:[#allocation2 + $0x18] sm:$0xff] %vm118_vm2, %v773_v35 }
 0xb55   :  { %v1450_v39 = vpop.eup %1449 }
 0xb56   :  { %v443_v40 = vadd.f32 1.0, %v1450_v39 }
 0xb58   :  { %1451 = vrcp.f32 %v443_v40  ;;  %v455_v46 = vand.u32 2147483648, %v443_v40  ;;  %vm449_vm8 = vweird.f32 %v443_v40  ;;  %v453_v47 = vand.u32 2147483647, %v443_v40 }
 0xb5a   :  { %v456_v49 = vor.u32 1.1754944e-38, %v455_v46  ;;  %vm454_vm10 = vcmp.eq.f32.partialorder %v453_v47, 8.507059e+37 }
 0xb5e   :  { %v1452_v41 = vpop.eup %1451 }
 0xb5f   :  { %v445_v42 = vmul.f32 %v1452_v41, %v443_v40  ;;  %vm450_vm6 = vweird.f32 %v1452_v41 }
 0xb60   :  { %vm451_vm9 = vmor %vm449_vm8, %vm450_vm6 }
 0xb61   :  { %v446_v43 = vsub.f32 1.0, %v445_v42  ;;  %v1778_v42 = vld [vmem:[%s1941_s5 + $0x10] sm:$0xff] }
 0xb63   :  { %v447_v44 = vmul.f32 %v1452_v41, %v446_v43  ;;  %v1785_v43 = vld [vmem:[%s1941_s5 + $0x8] sm:$0xff] }
 0xb65   :  { %v448_v45 = vadd.f32 %v1452_v41, %v447_v44  ;;  %v1792_v44 = vld [vmem:[%s1941_s5] sm:$0xff] }
 0xb67   :  { %v452_v48 = vsel %vm451_vm9, %v1452_v41, %v448_v45  ;;  %v1773_v41 = vld [vmem:[%s1941_s5 + $0x18] sm:$0xff] }
 0xb68   :  { %v457_v53 = vsel %vm454_vm10, %v456_v49, %v452_v48  ;;  %808 = vmatpush.msrb.mxu1 %v1773_v41  ;;  %876 = vmatpush.msra.mxu2 %v1773_v41  ;;  %v1813_v49 = vperm.slane %v1671_v50, 1 }
 0xb6a   :  { %809 = vmatpush.msrb.mxu1 %v1778_v42  ;;  %877 = vmatpush.msra.mxu2 %v1778_v42 }
 0xb6c   :  { %810 = vmatpush.msrb.mxu1 %v1785_v43  ;;  %878 = vmatpush.msra.mxu2 %v1785_v43 }
 0xb6e   :  { %811 = vmatpush.msrb.mxu1 %v1792_v44  ;;  %879 = vmatpush.msra.mxu2 %v1792_v44 }
 0xba5   :  { %v461_v52 = vpop.permute.xlu2 %460 }
 0xba6   :  { %v463_v54 = vmul.f32 %v461_v52, %v457_v53 }
 0xba8   :  { %465 = vrot.lane.b32.xlu0 %v463_v54, %s1522_s21 }
 0xc1a   :  { %v466_v55 = vpop.permute.xlu0 %465 }
 0xc1b   :  { %v468_v56 = vadd.f32 %v466_v55, %v416_v36  ;;  %v560_v55 = vld [vmem:[#allocation2 + $0x30] sm:$0xff] }
 0xc1d   :  { %1453 = vtanh.f32 %v468_v56 }
 0xc23   :  { %v1454_v57 = vpop.eup %1453 }
 0xc24   :  { %v470_v58 = vsub.f32 %v408_v1, %v1454_v57 }
 0xc26   :  { %472 = vrot.lane.b32.xlu1 %v470_v58, %s1523_s3  ;;  %v795_v58 = vld [vmem:[#allocation2] sm:$0xff] }
 0xc98   :  { %v473_v59 = vpop.permute.xlu1 %472 }
 0xc99   :  { %v475_v60 = vmul.f32 %v473_v59, %v457_v53 }
 0xc9b   :  { %477 = vrot.lane.b32.xlu2 %v475_v60, %s1524_s22 }
 0xcf5   :  { %v478_v0 = vpop.permute.xlu2 %477 }
 0xcf6   :  { %v480_v2 = vadd.f32 %v1454_v57, %v478_v0 }
 0xcf8   :  { %482 = vrot.lane.b32.xlu0 %v480_v2, %s1522_s21 }
 0xd6a   :  { %v483_v15 = vpop.permute.xlu0 %482 }
 0xd6b   :  { %486 = vst.msk [vmem:[#allocation3 + $0x20] sm:$0xff] %vm128_vm7, %v483_v15  ;;  %1390 = vmatmul.msk.f32.vlgmr.msrb.gmra.mxu0 %vm128_vm7, %v483_v15 }
 0xd72   :  { %v713_v16 = vld [vmem:[#allocation3 + $0x20] sm:$0xff] }
 0xd73   :  { %1400 = vmatmul.msk.f32.gmra.mxu3 %vm128_vm7, %v713_v16 }
 0xde8   :  { %v508_v17 = vpop.f32.mrf.mxu0 }
 0xde9   :  { %v509_v18 = vadd.f32 %v508_v17, %v1634_v11 }
 0xdeb   :  { %532 = vrot.lane.b32.xlu1 %v509_v18, %s1522_s21  ;;  %v511_v21 = vadd.f32 %v509_v18, %v488_v8 }
 0xded   :  { %v1391_v22 = vmul.f32 -1.442695, %v511_v21 }
 0xdef   :  { %1455 = vpow2.f32 %v1391_v22 }
 0xdf5   :  { %v1456_v23 = vpop.eup %1455 }
 0xdf6   :  { %v775_v19 = vpop.f32.mrf.mxu3  ;;  %v515_v24 = vadd.f32 1.0, %v1456_v23 }
 0xdf7   :  { %v776_v20 = vadd.f32 %v775_v19, %v1675_v51 }
 0xdf8   :  { %1457 = vrcp.f32 %v515_v24  ;;  %v527_v30 = vand.u32 2147483648, %v515_v24  ;;  %vm521_vm12 = vweird.f32 %v515_v24  ;;  %v525_v1 = vand.u32 2147483647, %v515_v24 }
 0xdf9   :  { %791 = vst.msk [vmem:[#allocation2 + $0x20] sm:$0xff] %vm118_vm2, %v776_v20 }
 0xdfa   :  { %v528_v3 = vor.u32 1.1754944e-38, %v527_v30  ;;  %vm526_vm14 = vcmp.eq.f32.partialorder %v525_v1, 8.507059e+37 }
 0xdfe   :  { %v1458_v25 = vpop.eup %1457 }
 0xdff   :  { %v517_v26 = vmul.f32 %v1458_v25, %v515_v24  ;;  %vm522_vm11 = vweird.f32 %v1458_v25 }
 0xe00   :  { %vm523_vm13 = vmor %vm521_vm12, %vm522_vm11 }
 0xe01   :  { %v518_v27 = vsub.f32 1.0, %v517_v26 }
 0xe03   :  { %v519_v28 = vmul.f32 %v1458_v25, %v518_v27 }
 0xe05   :  { %v520_v29 = vadd.f32 %v1458_v25, %v519_v28 }
 0xe07   :  { %v524_v31 = vsel %vm523_vm13, %v1458_v25, %v520_v29 }
 0xe08   :  { %v529_v32 = vsel %vm526_vm14, %v528_v3, %v524_v31 }
 0xe5d   :  { %v533_v4 = vpop.permute.xlu1 %532 }
 0xe5e   :  { %v535_v5 = vmul.f32 %v533_v4, %v529_v32 }
 0xe60   :  { %537 = vrot.lane.b32.xlu2 %v535_v5, %s1522_s21 }
 0xeba   :  { %v538_v33 = vpop.permute.xlu2 %537 }
 0xebb   :  { %v540_v34 = vadd.f32 %v538_v33, %v488_v8 }
 0xebd   :  { %1459 = vtanh.f32 %v540_v34 }
 0xec3   :  { %v1460_v35 = vpop.eup %1459 }
 0xec4   :  { %v542_v36 = vsub.f32 %v480_v2, %v1460_v35 }
 0xec6   :  { %544 = vrot.lane.b32.xlu0 %v542_v36, %s1523_s3 }
 0xf38   :  { %v545_v37 = vpop.permute.xlu0 %544 }
 0xf39   :  { %v547_v38 = vmul.f32 %v545_v37, %v529_v32 }
 0xf3b   :  { %549 = vrot.lane.b32.xlu1 %v547_v38, %s1524_s22 }
 0xfad   :  { %v550_v39 = vpop.permute.xlu1 %549 }
 0xfae   :  { %v1766_v40 = vadd.f32 %v1460_v35, %v550_v39 }
 0xfb0   :  { %554 = vrot.lane.b32.xlu2 %v1766_v40, %s1522_s21 }
0x100a   :  { %v555_v45 = vpop.permute.xlu2 %554 }
0x100b   :  { %558 = vst.msk [vmem:[#allocation3 + $0x28] sm:$0xff] %vm128_vm7, %v555_v45  ;;  %1392 = vmatmul.msk.f32.vlgmr.msra.gmra.mxu1 %vm128_vm7, %v555_v45 }
0x100c   :  { %944 = vmatpush.msra.mxu1 %v1773_v41 }
0x100e   :  { %945 = vmatpush.msra.mxu1 %v1778_v42 }
0x1010   :  { %946 = vmatpush.msra.mxu1 %v1785_v43 }
0x1012   :  { %v714_v46 = vld [vmem:[#allocation3 + $0x28] sm:$0xff]  ;;  %947 = vmatpush.msra.mxu1 %v1792_v44 }
0x1013   :  { %1401 = vmatmul.msk.f32.gmra.mxu3 %vm128_vm7, %v714_v46  ;;  %812 = vmatmul.f32.vlgmr.msrb.gmra.mxu1 %v1521_v6 }
0x1014   :  { %1080 = vmatpush.msrb.mxu1 %v1773_v41 }
0x1016   :  { %1081 = vmatpush.msrb.mxu1 %v1778_v42 }
0x1018   :  { %1082 = vmatpush.msrb.mxu1 %v1785_v43 }
0x101a   :  { %1083 = vmatpush.msrb.mxu1 %v1792_v44 }
0x1088   :  { %v580_v47 = vpop.f32.mrf.mxu1 }
0x1089   :  { %v581_v48 = vadd.f32 %v580_v47, %v1634_v11 }
0x108b   :  { %604 = vrot.lane.b32.xlu0 %v581_v48, %s1522_s21  ;;  %v583_v56 = vadd.f32 %v581_v48, %v560_v55 }
0x108d   :  { %v1393_v57 = vmul.f32 -1.442695, %v583_v56  ;;  %v858_v56 = vld [vmem:[#allocation2 + $0x8] sm:$0xff] }
0x108f   :  { %1461 = vpow2.f32 %v1393_v57 }
0x1090   :  { %v813_v52 = vpop.f32.mrf.mxu1 }
0x1091   :  { %v814_v53 = vadd.f32 %v813_v52, %v1813_v49 }
0x1093   :  { %837 = vrot.lane.b32.xlu1 %v814_v53, %s1522_s21  ;;  %v816_v59 = vadd.f32 %v814_v53, %v795_v58 }
0x1095   :  { %v1404_v60 = vmul.f32 -1.442695, %v816_v59  ;;  %v1462_v61 = vpop.eup %1461 }
0x1096   :  { %v778_v6 = vpop.f32.mrf.mxu3  ;;  %v587_v50 = vadd.f32 1.0, %v1462_v61 }
0x1097   :  { %v779_v54 = vadd.f32 %v778_v6, %v1675_v51  ;;  %1463 = vpow2.f32 %v1404_v60 }
0x1098   :  { %1465 = vrcp.f32 %v587_v50  ;;  %v599_v15 = vand.u32 2147483648, %v587_v50  ;;  %vm593_vm0 = vweird.f32 %v587_v50  ;;  %v597_v16 = vand.u32 2147483647, %v587_v50 }
0x1099   :  { %792 = vst.msk [vmem:[#allocation2 + $0x28] sm:$0xff] %vm118_vm2, %v779_v54 }
0x109a   :  { %v600_v19 = vor.u32 1.1754944e-38, %v599_v15  ;;  %vm598_vm4 = vcmp.eq.f32.partialorder %v597_v16, 8.507059e+37 }
0x109d   :  { %v1464_v62 = vpop.eup %1463 }
0x109e   :  { %v820_v63 = vadd.f32 1.0, %v1464_v62  ;;  %v1466_v0 = vpop.eup %1465 }
0x109f   :  { %v589_v2 = vmul.f32 %v1466_v0, %v587_v50  ;;  %vm594_vm15 = vweird.f32 %v1466_v0 }
0x10a0   :  { %1467 = vrcp.f32 %v820_v63  ;;  %vm595_vm3 = vmor %vm593_vm0, %vm594_vm15  ;;  %v832_v23 = vand.u32 2147483648, %v820_v63  ;;  %vm826_vm6 = vweird.f32 %v820_v63  ;;  %v830_v24 = vand.u32 2147483647, %v820_v63 }
0x10a1   :  { %v590_v7 = vsub.f32 1.0, %v589_v2 }
0x10a2   :  { %v833_v26 = vor.u32 1.1754944e-38, %v832_v23  ;;  %vm831_vm9 = vcmp.eq.f32.partialorder %v830_v24, 8.507059e+37 }
0x10a3   :  { %v591_v10 = vmul.f32 %v1466_v0, %v590_v7 }
0x10a5   :  { %v592_v13 = vadd.f32 %v1466_v0, %v591_v10 }
0x10a6   :  { %v1468_v9 = vpop.eup %1467 }
0x10a7   :  { %v822_v12 = vmul.f32 %v1468_v9, %v820_v63  ;;  %v596_v17 = vsel %vm595_vm3, %v1466_v0, %v592_v13  ;;  %vm827_vm5 = vweird.f32 %v1468_v9 }
0x10a8   :  { %v601_v8 = vsel %vm598_vm4, %v600_v19, %v596_v17  ;;  %vm828_vm8 = vmor %vm826_vm6, %vm827_vm5 }
0x10a9   :  { %v823_v14 = vsub.f32 1.0, %v822_v12 }
0x10ab   :  { %v824_v18 = vmul.f32 %v1468_v9, %v823_v14 }
0x10ad   :  { %v825_v22 = vadd.f32 %v1468_v9, %v824_v18 }
0x10af   :  { %v829_v25 = vsel %vm828_vm8, %v1468_v9, %v825_v22 }
0x10b0   :  { %v834_v28 = vsel %vm831_vm9, %v833_v26, %v829_v25  ;;  %v926_v25 = vld [vmem:[#allocation2 + $0x10] sm:$0xff] }
0x10fd   :  { %v605_v20 = vpop.permute.xlu0 %604 }
0x10fe   :  { %v607_v21 = vmul.f32 %v605_v20, %v601_v8 }
0x1100   :  { %609 = vrot.lane.b32.xlu2 %v607_v21, %s1522_s21 }
0x1105   :  { %v838_v27 = vpop.permute.xlu1 %837 }
0x1106   :  { %v840_v29 = vmul.f32 %v838_v27, %v834_v28 }
0x1108   :  { %842 = vrot.lane.b32.xlu0 %v840_v29, %s1522_s21 }
0x115a   :  { %v610_v30 = vpop.permute.xlu2 %609 }
0x115b   :  { %v612_v1 = vadd.f32 %v610_v30, %v560_v55 }
0x115d   :  { %1469 = vtanh.f32 %v612_v1 }
0x1163   :  { %v1470_v31 = vpop.eup %1469 }
0x1164   :  { %v614_v3 = vsub.f32 %v1766_v40, %v1470_v31 }
0x1166   :  { %616 = vrot.lane.b32.xlu1 %v614_v3, %s1523_s3 }
0x117a   :  { %v843_v4 = vpop.permute.xlu0 %842 }
0x117b   :  { %v845_v32 = vadd.f32 %v843_v4, %v795_v58 }
0x117d   :  { %1471 = vtanh.f32 %v845_v32 }
0x1183   :  { %v1472_v5 = vpop.eup %1471 }
0x1184   :  { %v847_v33 = vsub.f32 0.0, %v1472_v5 }
0x1186   :  { %849 = vrot.lane.b32.xlu2 %v847_v33, %s1523_s3 }
0x11d8   :  { %v617_v34 = vpop.permute.xlu1 %616 }
0x11d9   :  { %v619_v35 = vmul.f32 %v617_v34, %v601_v8 }
0x11db   :  { %621 = vrot.lane.b32.xlu0 %v619_v35, %s1524_s22 }
0x11e0   :  { %v850_v36 = vpop.permute.xlu2 %849 }
0x11e1   :  { %v852_v37 = vmul.f32 %v850_v36, %v834_v28 }
0x11e3   :  { %854 = vrot.lane.b32.xlu1 %v852_v37, %s1524_s22 }
0x124d   :  { %v622_v38 = vpop.permute.xlu0 %621 }
0x124e   :  { %v1826_v39 = vadd.f32 %v1470_v31, %v622_v38 }
0x1250   :  { %626 = vrot.lane.b32.xlu2 %v1826_v39, %s1522_s21 }
0x1255   :  { %v855_v40 = vpop.permute.xlu1 %854 }
0x1256   :  { %v857_v45 = vadd.f32 %v1472_v5, %v855_v40 }
0x1258   :  { %860 = vrot.lane.b32.xlu0 %v857_v45, %s1522_s21 }
0x12aa   :  { %v627_v46 = vpop.permute.xlu2 %626 }
0x12ab   :  { %630 = vst.msk [vmem:[#allocation3 + $0x30] sm:$0xff] %vm128_vm7, %v627_v46  ;;  %1394 = vmatmul.msk.f32.vlgmr.msrb.gmra.mxu2 %vm128_vm7, %v627_v46 }
0x12ac   :  { %1012 = vmatpush.msrb.mxu2 %v1773_v41 }
0x12ae   :  { %1013 = vmatpush.msrb.mxu2 %v1778_v42 }
0x12b0   :  { %1014 = vmatpush.msrb.mxu2 %v1785_v43 }
0x12b2   :  { %v715_v47 = vld [vmem:[#allocation3 + $0x30] sm:$0xff]  ;;  %1015 = vmatpush.msrb.mxu2 %v1792_v44 }
0x12b3   :  { %1402 = vmatmul.msk.f32.gmra.mxu3 %vm128_vm7, %v715_v47 }
0x12ca   :  { %v861_v48 = vpop.permute.xlu0 %860 }
0x12cb   :  { %1405 = vmatmul.msk.f32.vlgmr.msra.gmra.mxu2 %vm128_vm7, %v861_v48 }
0x12cc   :  { %1148 = vmatpush.msra.mxu2 %v1773_v41 }
0x12ce   :  { %1149 = vmatpush.msra.mxu2 %v1778_v42 }
0x12d0   :  { %1150 = vmatpush.msra.mxu2 %v1785_v43 }
0x12d2   :  { %1151 = vmatpush.msra.mxu2 %v1792_v44 }
0x132e   :  { %v1845_v6 = vpop.f32.mrf.mxu2 }
0x1336   :  { %v781_v52 = vpop.f32.mrf.mxu3 }
0x1337   :  { %v782_v53 = vadd.f32 %v781_v52, %v1675_v51 }
0x1339   :  { %793 = vst.msk [vmem:[#allocation2 + $0x30] sm:$0xff] %vm118_vm2, %v782_v53 }
0x134e   :  { %v881_v54 = vpop.f32.mrf.mxu2 }
0x134f   :  { %v882_v55 = vadd.f32 %v881_v54, %v1813_v49 }
0x1351   :  { %905 = vrot.lane.b32.xlu1 %v882_v55, %s1522_s21  ;;  %v884_v57 = vadd.f32 %v882_v55, %v858_v56 }
0x1353   :  { %v1406_v58 = vmul.f32 -1.442695, %v884_v57  ;;  %v994_v57 = vld [vmem:[#allocation2 + $0x18] sm:$0xff] }
0x1355   :  { %1473 = vpow2.f32 %v1406_v58 }
0x135b   :  { %v1474_v59 = vpop.eup %1473 }
0x135c   :  { %v888_v60 = vadd.f32 1.0, %v1474_v59 }
0x135e   :  { %1475 = vrcp.f32 %v888_v60  ;;  %v900_v2 = vand.u32 2147483648, %v888_v60  ;;  %vm894_vm11 = vweird.f32 %v888_v60  ;;  %v898_v7 = vand.u32 2147483647, %v888_v60 }
0x1360   :  { %v901_v10 = vor.u32 1.1754944e-38, %v900_v2  ;;  %vm899_vm13 = vcmp.eq.f32.partialorder %v898_v7, 8.507059e+37 }
0x1364   :  { %v1476_v61 = vpop.eup %1475 }
0x1365   :  { %v890_v50 = vmul.f32 %v1476_v61, %v888_v60  ;;  %vm895_vm10 = vweird.f32 %v1476_v61 }
0x1366   :  { %vm896_vm12 = vmor %vm894_vm11, %vm895_vm10 }
0x1367   :  { %v891_v62 = vsub.f32 1.0, %v890_v50 }
0x1369   :  { %v892_v63 = vmul.f32 %v1476_v61, %v891_v62 }
0x136b   :  { %v893_v0 = vadd.f32 %v1476_v61, %v892_v63 }
0x136d   :  { %v897_v9 = vsel %vm896_vm12, %v1476_v61, %v893_v0 }
0x136e   :  { %v902_v13 = vsel %vm899_vm13, %v901_v10, %v897_v9 }
0x13c3   :  { %v906_v12 = vpop.permute.xlu1 %905 }
0x13c4   :  { %v908_v14 = vmul.f32 %v906_v12, %v902_v13 }
0x13c6   :  { %910 = vrot.lane.b32.xlu2 %v908_v14, %s1522_s21 }
0x1420   :  { %v911_v15 = vpop.permute.xlu2 %910 }
0x1421   :  { %v913_v16 = vadd.f32 %v911_v15, %v858_v56 }
0x1423   :  { %1477 = vtanh.f32 %v913_v16 }
0x1429   :  { %v1478_v17 = vpop.eup %1477 }
0x142a   :  { %v915_v18 = vsub.f32 %v857_v45, %v1478_v17 }
0x142c   :  { %917 = vrot.lane.b32.xlu0 %v915_v18, %s1523_s3 }
0x149e   :  { %v918_v19 = vpop.permute.xlu0 %917 }
0x149f   :  { %v920_v20 = vmul.f32 %v918_v19, %v902_v13 }
0x14a1   :  { %922 = vrot.lane.b32.xlu1 %v920_v20, %s1524_s22 }
0x1513   :  { %v923_v8 = vpop.permute.xlu1 %922 }
0x1514   :  { %v925_v21 = vadd.f32 %v1478_v17, %v923_v8 }
0x1516   :  { %928 = vrot.lane.b32.xlu2 %v925_v21, %s1522_s21 }
0x1570   :  { %v929_v22 = vpop.permute.xlu2 %928 }
0x1571   :  { %1407 = vmatmul.msk.f32.vlgmr.msra.gmra.mxu1 %vm128_vm7, %v929_v22  ;;  %v1062_v22 = vld [vmem:[#allocation2 + $0x20] sm:$0xff] }
0x1572   :  { %1216 = vmatpush.msra.mxu1 %v1773_v41 }
0x1574   :  { %1217 = vmatpush.msra.mxu1 %v1778_v42 }
0x1576   :  { %1218 = vmatpush.msra.mxu1 %v1785_v43 }
0x1578   :  { %1219 = vmatpush.msra.mxu1 %v1792_v44 }
0x15ee   :  { %v949_v23 = vpop.f32.mrf.mxu1 }
0x15ef   :  { %v950_v24 = vadd.f32 %v949_v23, %v1813_v49 }
0x15f1   :  { %973 = vrot.lane.b32.xlu0 %v950_v24, %s1522_s21  ;;  %v952_v26 = vadd.f32 %v950_v24, %v926_v25 }
0x15f3   :  { %v1408_v27 = vmul.f32 -1.442695, %v952_v26 }
0x15f5   :  { %1479 = vpow2.f32 %v1408_v27 }
0x15fb   :  { %v1480_v28 = vpop.eup %1479 }
0x15fc   :  { %v956_v29 = vadd.f32 1.0, %v1480_v28 }
0x15fe   :  { %1481 = vrcp.f32 %v956_v29  ;;  %v968_v32 = vand.u32 2147483648, %v956_v29  ;;  %vm962_vm15 = vweird.f32 %v956_v29  ;;  %v966_v5 = vand.u32 2147483647, %v956_v29 }
0x1600   :  { %v969_v34 = vor.u32 1.1754944e-38, %v968_v32  ;;  %vm967_vm3 = vcmp.eq.f32.partialorder %v966_v5, 8.507059e+37 }
0x1604   :  { %v1482_v30 = vpop.eup %1481 }
0x1605   :  { %v958_v1 = vmul.f32 %v1482_v30, %v956_v29  ;;  %vm963_vm14 = vweird.f32 %v1482_v30 }
0x1606   :  { %vm964_vm0 = vmor %vm962_vm15, %vm963_vm14 }
0x1607   :  { %v959_v31 = vsub.f32 1.0, %v958_v1 }
0x1609   :  { %v960_v3 = vmul.f32 %v1482_v30, %v959_v31 }
0x160b   :  { %v961_v4 = vadd.f32 %v1482_v30, %v960_v3 }
0x160d   :  { %v965_v33 = vsel %vm964_vm0, %v1482_v30, %v961_v4 }
0x160e   :  { %v970_v36 = vsel %vm967_vm3, %v969_v34, %v965_v33 }
0x1663   :  { %v974_v35 = vpop.permute.xlu0 %973 }
0x1664   :  { %v976_v37 = vmul.f32 %v974_v35, %v970_v36 }
0x1666   :  { %978 = vrot.lane.b32.xlu1 %v976_v37, %s1522_s21 }
0x16d8   :  { %v979_v38 = vpop.permute.xlu1 %978 }
0x16d9   :  { %v981_v40 = vadd.f32 %v979_v38, %v926_v25 }
0x16db   :  { %1483 = vtanh.f32 %v981_v40 }
0x16e1   :  { %v1484_v45 = vpop.eup %1483 }
0x16e2   :  { %v983_v46 = vsub.f32 %v925_v21, %v1484_v45 }
0x16e4   :  { %985 = vrot.lane.b32.xlu2 %v983_v46, %s1523_s3 }
0x173e   :  { %v986_v47 = vpop.permute.xlu2 %985 }
0x173f   :  { %v988_v48 = vmul.f32 %v986_v47, %v970_v36 }
0x1741   :  { %990 = vrot.lane.b32.xlu0 %v988_v48, %s1524_s22 }
0x17b3   :  { %v991_v52 = vpop.permute.xlu0 %990 }
0x17b4   :  { %v993_v53 = vadd.f32 %v1484_v45, %v991_v52 }
0x17b6   :  { %996 = vrot.lane.b32.xlu1 %v993_v53, %s1522_s21 }
0x1828   :  { %v997_v54 = vpop.permute.xlu1 %996 }
0x1829   :  { %1409 = vmatmul.msk.f32.vlgmr.msrb.gmra.mxu2 %vm128_vm7, %v997_v54  ;;  %v1130_v54 = vld [vmem:[#allocation2 + $0x28] sm:$0xff] }
0x182a   :  { %1284 = vmatpush.msrb.mxu2 %v1773_v41 }
0x182c   :  { %1285 = vmatpush.msrb.mxu2 %v1778_v42 }
0x182e   :  { %1286 = vmatpush.msrb.mxu2 %v1785_v43 }
0x1830   :  { %1287 = vmatpush.msrb.mxu2 %v1792_v44 }
0x18ac   :  { %v1017_v55 = vpop.f32.mrf.mxu2 }
0x18ad   :  { %v1018_v56 = vadd.f32 %v1017_v55, %v1813_v49 }
0x18af   :  { %1041 = vrot.lane.b32.xlu2 %v1018_v56, %s1522_s21  ;;  %v1020_v58 = vadd.f32 %v1018_v56, %v994_v57 }
0x18b1   :  { %v1410_v59 = vmul.f32 -1.442695, %v1020_v58 }
0x18b3   :  { %1485 = vpow2.f32 %v1410_v59 }
0x18b9   :  { %v1486_v60 = vpop.eup %1485 }
0x18ba   :  { %v1024_v61 = vadd.f32 1.0, %v1486_v60 }
0x18bc   :  { %1487 = vrcp.f32 %v1024_v61  ;;  %v1036_v43 = vand.u32 2147483648, %v1024_v61  ;;  %vm1030_vm5 = vweird.f32 %v1024_v61  ;;  %v1034_v44 = vand.u32 2147483647, %v1024_v61 }
0x18be   :  { %v1037_v2 = vor.u32 1.1754944e-38, %v1036_v43  ;;  %vm1035_vm8 = vcmp.eq.f32.partialorder %v1034_v44, 8.507059e+37 }
0x18c2   :  { %v1488_v50 = vpop.eup %1487 }
0x18c3   :  { %v1026_v41 = vmul.f32 %v1488_v50, %v1024_v61  ;;  %vm1031_vm4 = vweird.f32 %v1488_v50 }
0x18c4   :  { %vm1032_vm6 = vmor %vm1030_vm5, %vm1031_vm4 }
0x18c5   :  { %v1027_v62 = vsub.f32 1.0, %v1026_v41 }
0x18c7   :  { %v1028_v42 = vmul.f32 %v1488_v50, %v1027_v62 }
0x18c9   :  { %v1029_v63 = vadd.f32 %v1488_v50, %v1028_v42 }
0x18cb   :  { %v1033_v0 = vsel %vm1032_vm6, %v1488_v50, %v1029_v63 }
0x18cc   :  { %v1038_v9 = vsel %vm1035_vm8, %v1037_v2, %v1033_v0 }
0x1909   :  { %v1042_v7 = vpop.permute.xlu2 %1041 }
0x190a   :  { %v1044_v10 = vmul.f32 %v1042_v7, %v1038_v9 }
0x190c   :  { %1046 = vrot.lane.b32.xlu0 %v1044_v10, %s1522_s21 }
0x197e   :  { %v1047_v12 = vpop.permute.xlu0 %1046 }
0x197f   :  { %v1049_v13 = vadd.f32 %v1047_v12, %v994_v57 }
0x1981   :  { %1489 = vtanh.f32 %v1049_v13  ;;  %v653_v13 = vadd.f32 %v1845_v6, %v1634_v11 }
0x1987   :  { %v1490_v14 = vpop.eup %1489 }
0x1988   :  { %v1051_v15 = vsub.f32 %v993_v53, %v1490_v14 }
0x198a   :  { %1053 = vrot.lane.b32.xlu1 %v1051_v15, %s1523_s3 }
0x19fc   :  { %v1054_v16 = vpop.permute.xlu1 %1053 }
0x19fd   :  { %v1056_v17 = vmul.f32 %v1054_v16, %v1038_v9  ;;  %v632_v16 = vld [vmem:[#allocation2 + $0x38] sm:$0xff] }
0x19ff   :  { %1058 = vrot.lane.b32.xlu2 %v1056_v17, %s1524_s22  ;;  %v655_v17 = vadd.f32 %v653_v13, %v632_v16 }
0x1a59   :  { %v1059_v18 = vpop.permute.xlu2 %1058 }
0x1a5a   :  { %v1061_v19 = vadd.f32 %v1490_v14, %v1059_v18  ;;  %v1395_v18 = vmul.f32 -1.442695, %v655_v17 }
0x1a5c   :  { %1064 = vrot.lane.b32.xlu0 %v1061_v19, %s1522_s21 }
0x1ace   :  { %v1065_v20 = vpop.permute.xlu0 %1064 }
0x1acf   :  { %1411 = vmatmul.msk.f32.vlgmr.msrb.gmra.mxu1 %vm128_vm7, %v1065_v20 }
0x1b4c   :  { %v1085_v8 = vpop.f32.mrf.mxu1 }
0x1b4d   :  { %v1086_v21 = vadd.f32 %v1085_v8, %v1813_v49 }
0x1b4f   :  { %1109 = vrot.lane.b32.xlu1 %v1086_v21, %s1522_s21  ;;  %v1088_v23 = vadd.f32 %v1086_v21, %v1062_v22 }
0x1b51   :  { %v1412_v24 = vmul.f32 -1.442695, %v1088_v23 }
0x1b53   :  { %1491 = vpow2.f32 %v1412_v24 }
0x1b59   :  { %v1492_v25 = vpop.eup %1491 }
0x1b5a   :  { %v1092_v26 = vadd.f32 1.0, %v1492_v25 }
0x1b5c   :  { %1493 = vrcp.f32 %v1092_v26  ;;  %v1104_v31 = vand.u32 2147483648, %v1092_v26  ;;  %vm1098_vm10 = vweird.f32 %v1092_v26  ;;  %v1102_v3 = vand.u32 2147483647, %v1092_v26 }
0x1b5e   :  { %v1105_v32 = vor.u32 1.1754944e-38, %v1104_v31  ;;  %vm1103_vm12 = vcmp.eq.f32.partialorder %v1102_v3, 8.507059e+37 }
0x1b62   :  { %v1494_v27 = vpop.eup %1493 }
0x1b63   :  { %v1094_v28 = vmul.f32 %v1494_v27, %v1092_v26  ;;  %vm1099_vm9 = vweird.f32 %v1494_v27 }
0x1b64   :  { %vm1100_vm11 = vmor %vm1098_vm10, %vm1099_vm9 }
0x1b65   :  { %v1095_v29 = vsub.f32 1.0, %v1094_v28 }
0x1b67   :  { %v1096_v30 = vmul.f32 %v1494_v27, %v1095_v29 }
0x1b69   :  { %v1097_v1 = vadd.f32 %v1494_v27, %v1096_v30 }
0x1b6b   :  { %v1101_v4 = vsel %vm1100_vm11, %v1494_v27, %v1097_v1 }
0x1b6c   :  { %v1106_v33 = vsel %vm1103_vm12, %v1105_v32, %v1101_v4 }
0x1bc1   :  { %v1110_v5 = vpop.permute.xlu1 %1109 }
0x1bc2   :  { %v1112_v34 = vmul.f32 %v1110_v5, %v1106_v33 }
0x1bc4   :  { %1114 = vrot.lane.b32.xlu2 %v1112_v34, %s1522_s21 }
0x1c1e   :  { %v1115_v35 = vpop.permute.xlu2 %1114 }
0x1c1f   :  { %v1117_v36 = vadd.f32 %v1115_v35, %v1062_v22  ;;  %v1198_v35 = vld [vmem:[#allocation2 + $0x30] sm:$0xff] }
0x1c21   :  { %1495 = vtanh.f32 %v1117_v36 }
0x1c27   :  { %v1496_v37 = vpop.eup %1495 }
0x1c28   :  { %v1119_v38 = vsub.f32 %v1061_v19, %v1496_v37 }
0x1c2a   :  { %1121 = vrot.lane.b32.xlu0 %v1119_v38, %s1523_s3 }
0x1c9c   :  { %v1122_v40 = vpop.permute.xlu0 %1121 }
0x1c9d   :  { %v1124_v45 = vmul.f32 %v1122_v40, %v1106_v33 }
0x1c9f   :  { %1126 = vrot.lane.b32.xlu1 %v1124_v45, %s1524_s22 }
0x1d11   :  { %v1127_v46 = vpop.permute.xlu1 %1126 }
0x1d12   :  { %v1129_v47 = vadd.f32 %v1496_v37, %v1127_v46 }
0x1d14   :  { %1132 = vrot.lane.b32.xlu2 %v1129_v47, %s1522_s21 }
0x1d6e   :  { %v1133_v48 = vpop.permute.xlu2 %1132 }
0x1d6f   :  { %1413 = vmatmul.msk.f32.vlgmr.msra.gmra.mxu2 %vm128_vm7, %v1133_v48 }
0x1df2   :  { %v1153_v52 = vpop.f32.mrf.mxu2 }
0x1df3   :  { %v1154_v53 = vadd.f32 %v1153_v52, %v1813_v49 }
0x1df5   :  { %1177 = vrot.lane.b32.xlu0 %v1154_v53, %s1522_s21  ;;  %v1156_v55 = vadd.f32 %v1154_v53, %v1130_v54 }
0x1df7   :  { %v1414_v56 = vmul.f32 -1.442695, %v1156_v55 }
0x1df9   :  { %1497 = vpow2.f32 %v1414_v56 }
0x1dff   :  { %v1498_v57 = vpop.eup %1497 }
0x1e00   :  { %v1160_v58 = vadd.f32 1.0, %v1498_v57 }
0x1e02   :  { %1499 = vrcp.f32 %v1160_v58  ;;  %v1172_v62 = vand.u32 2147483648, %v1160_v58  ;;  %vm1166_vm14 = vweird.f32 %v1160_v58  ;;  %v1170_v42 = vand.u32 2147483647, %v1160_v58 }
0x1e04   :  { %v1173_v43 = vor.u32 1.1754944e-38, %v1172_v62  ;;  %vm1171_vm0 = vcmp.eq.f32.partialorder %v1170_v42, 8.507059e+37 }
0x1e08   :  { %v1500_v59 = vpop.eup %1499 }
0x1e09   :  { %v1162_v60 = vmul.f32 %v1500_v59, %v1160_v58  ;;  %vm1167_vm13 = vweird.f32 %v1500_v59 }
0x1e0a   :  { %vm1168_vm15 = vmor %vm1166_vm14, %vm1167_vm13 }
0x1e0b   :  { %v1163_v61 = vsub.f32 1.0, %v1162_v60 }
0x1e0d   :  { %v1164_v50 = vmul.f32 %v1500_v59, %v1163_v61 }
0x1e0f   :  { %v1165_v41 = vadd.f32 %v1500_v59, %v1164_v50 }
0x1e11   :  { %v1169_v63 = vsel %vm1168_vm15, %v1500_v59, %v1165_v41 }
0x1e12   :  { %v1174_v0 = vsel %vm1171_vm0, %v1173_v43, %v1169_v63 }
0x1e67   :  { %v1178_v44 = vpop.permute.xlu0 %1177 }
0x1e68   :  { %v1180_v2 = vmul.f32 %v1178_v44, %v1174_v0 }
0x1e6a   :  { %1182 = vrot.lane.b32.xlu1 %v1180_v2, %s1522_s21 }
0x1edc   :  { %v1183_v7 = vpop.permute.xlu1 %1182 }
0x1edd   :  { %v1185_v9 = vadd.f32 %v1183_v7, %v1130_v54 }
0x1edf   :  { %1501 = vtanh.f32 %v1185_v9 }
0x1ee0   :  { %1503 = vpow2.f32 %v1395_v18 }
0x1ee5   :  { %v1502_v10 = vpop.eup %1501 }
0x1ee6   :  { %v1187_v12 = vsub.f32 %v1129_v47, %v1502_v10  ;;  %v1504_v19 = vpop.eup %1503 }
0x1ee7   :  { %v659_v20 = vadd.f32 1.0, %v1504_v19 }
0x1ee8   :  { %1189 = vrot.lane.b32.xlu2 %v1187_v12, %s1523_s3 }
0x1ee9   :  { %1505 = vrcp.f32 %v659_v20  ;;  %v671_v6 = vand.u32 2147483648, %v659_v20  ;;  %vm665_vm4 = vweird.f32 %v659_v20  ;;  %v669_v26 = vand.u32 2147483647, %v659_v20 }
0x1eeb   :  { %v672_v28 = vor.u32 1.1754944e-38, %v671_v6  ;;  %vm670_vm6 = vcmp.eq.f32.partialorder %v669_v26, 8.507059e+37 }
0x1eef   :  { %v1506_v8 = vpop.eup %1505 }
0x1ef0   :  { %676 = vrot.lane.b32.xlu2 %v653_v13, %s1522_s21  ;;  %v661_v21 = vmul.f32 %v1506_v8, %v659_v20  ;;  %vm666_vm3 = vweird.f32 %v1506_v8 }
0x1ef1   :  { %vm667_vm5 = vmor %vm665_vm4, %vm666_vm3 }
0x1ef2   :  { %v662_v22 = vsub.f32 1.0, %v661_v21 }
0x1ef4   :  { %v663_v23 = vmul.f32 %v1506_v8, %v662_v22 }
0x1ef6   :  { %v664_v25 = vadd.f32 %v1506_v8, %v663_v23 }
0x1ef8   :  { %v668_v27 = vsel %vm667_vm5, %v1506_v8, %v664_v25 }
0x1ef9   :  { %v673_v30 = vsel %vm670_vm6, %v672_v28, %v668_v27 }
0x1f42   :  { %v1190_v14 = vpop.permute.xlu2 %1189 }
0x1f43   :  { %v1192_v15 = vmul.f32 %v1190_v14, %v1174_v0 }
0x1f45   :  { %1194 = vrot.lane.b32.xlu0 %v1192_v15, %s1524_s22 }
0x1f4a   :  { %v677_v29 = vpop.permute.xlu2 %676 }
0x1f4b   :  { %v679_v1 = vmul.f32 %v677_v29, %v673_v30 }
0x1fb7   :  { %v1195_v24 = vpop.permute.xlu0 %1194 }
0x1fb8   :  { %v1197_v11 = vadd.f32 %v1502_v10, %v1195_v24 }
0x1fba   :  { %1200 = vrot.lane.b32.xlu1 %v1197_v11, %s1522_s21 }
0x1fc2   :  { %681 = vrot.lane.b32.xlu1 %v679_v1, %s1522_s21 }
0x202c   :  { %v1201_v31 = vpop.permute.xlu1 %1200 }
0x202d   :  { %1415 = vmatmul.msk.f32.vlgmr.msra.gmra.mxu1 %vm128_vm7, %v1201_v31 }
0x2034   :  { %v682_v3 = vpop.permute.xlu1 %681 }
0x2035   :  { %v684_v4 = vadd.f32 %v682_v3, %v632_v16 }
0x2037   :  { %1507 = vtanh.f32 %v684_v4  ;;  %v1337_v4 = vld [vmem:[%s1942_s7 + $0x18] sm:$0xff] }
0x2038   :  { %1359 = vmatpush.msrb.mxu1 %v1337_v4 }
0x203d   :  { %v1508_v33 = vpop.eup %1507 }
0x203e   :  { %v686_v34 = vsub.f32 %v1826_v39, %v1508_v33 }
0x20aa   :  { %v1221_v32 = vpop.f32.mrf.mxu1 }
0x20ab   :  { %v1222_v5 = vadd.f32 %v1221_v32, %v1813_v49  ;;  %v1336_v32 = vld [vmem:[%s1942_s7 + $0x10] sm:$0xff] }
0x20ac   :  { %1360 = vmatpush.msrb.mxu1 %v1336_v32 }
0x20ad   :  { %1245 = vrot.lane.b32.xlu0 %v1222_v5, %s1522_s21  ;;  %v1224_v36 = vadd.f32 %v1222_v5, %v1198_v35  ;;  %v1335_v5 = vld [vmem:[%s1942_s7 + $0x8] sm:$0xff] }
0x20ae   :  { %1361 = vmatpush.msrb.mxu1 %v1335_v5 }
0x20af   :  { %v1416_v37 = vmul.f32 -1.442695, %v1224_v36 }
0x20b1   :  { %1509 = vpow2.f32 %v1416_v37  ;;  %v1424_v37 = vld [vmem:[%s1943_s8] ss:$0 sm:$0xff] }
0x20b5   :  { %688 = vrot.lane.b32.xlu0 %v686_v34, %s1523_s3 }
0x20b7   :  { %v1510_v38 = vpop.eup %1509 }
0x20b8   :  { %v1228_v40 = vadd.f32 1.0, %v1510_v38 }
0x20ba   :  { %1511 = vrcp.f32 %v1228_v40  ;;  %v1240_v53 = vand.u32 2147483648, %v1228_v40  ;;  %vm1234_vm9 = vweird.f32 %v1228_v40  ;;  %v1238_v54 = vand.u32 2147483647, %v1228_v40 }
0x20bc   :  { %v1241_v55 = vor.u32 1.1754944e-38, %v1240_v53  ;;  %vm1239_vm11 = vcmp.eq.f32.partialorder %v1238_v54, 8.507059e+37 }
0x20c0   :  { %v1512_v45 = vpop.eup %1511 }
0x20c1   :  { %v1230_v46 = vmul.f32 %v1512_v45, %v1228_v40  ;;  %vm1235_vm8 = vweird.f32 %v1512_v45 }
0x20c2   :  { %vm1236_vm10 = vmor %vm1234_vm9, %vm1235_vm8 }
0x20c3   :  { %v1231_v47 = vsub.f32 1.0, %v1230_v46 }
0x20c5   :  { %v1232_v48 = vmul.f32 %v1512_v45, %v1231_v47 }
0x20c7   :  { %v1233_v52 = vadd.f32 %v1512_v45, %v1232_v48 }
0x20c9   :  { %v1237_v39 = vsel %vm1236_vm10, %v1512_v45, %v1233_v52 }
0x20ca   :  { %v1242_v57 = vsel %vm1239_vm11, %v1241_v55, %v1237_v39 }
0x211f   :  { %v1246_v56 = vpop.permute.xlu0 %1245 }
0x2120   :  { %v1248_v58 = vmul.f32 %v1246_v56, %v1242_v57 }
0x2122   :  { %1250 = vrot.lane.b32.xlu2 %v1248_v58, %s1522_s21 }
0x2127   :  { %v689_v59 = vpop.permute.xlu0 %688 }
0x2128   :  { %v691_v60 = vmul.f32 %v689_v59, %v673_v30 }
0x212a   :  { %693 = vrot.lane.b32.xlu2 %v691_v60, %s1524_s22 }
0x217c   :  { %v1251_v61 = vpop.permute.xlu2 %1250 }
0x217d   :  { %v1253_v50 = vadd.f32 %v1251_v61, %v1198_v35 }
0x217f   :  { %1513 = vtanh.f32 %v1253_v50 }
0x2184   :  { %v694_v42 = vpop.permute.xlu2 %693 }
0x2185   :  { %v1514_v41 = vpop.eup %1513  ;;  %v696_v63 = vadd.f32 %v1508_v33, %v694_v42  ;;  %v1334_v33 = vld [vmem:[%s1942_s7] sm:$0xff] }
0x2186   :  { %v1255_v62 = vsub.f32 %v1197_v11, %v1514_v41  ;;  %1362 = vmatpush.msrb.mxu1 %v1334_v33 }
0x2188   :  { %1257 = vrot.lane.b32.xlu1 %v1255_v62, %s1523_s3 }
0x2190   :  { %698 = vrot.lane.b32.xlu1 %v696_v63, %s1522_s21 }
0x21fa   :  { %v1258_v43 = vpop.permute.xlu1 %1257 }
0x21fb   :  { %v1260_v44 = vmul.f32 %v1258_v43, %v1242_v57 }
0x21fd   :  { %1262 = vrot.lane.b32.xlu0 %v1260_v44, %s1524_s22 }
0x2202   :  { %v699_v0 = vpop.permute.xlu1 %698 }
0x2203   :  { %702 = vst.msk [vmem:[#allocation3 + $0x38] sm:$0xff] %vm128_vm7, %v699_v0 }
0x220a   :  { %v716_v2 = vld [vmem:[#allocation3 + $0x38] sm:$0xff] }
0x220b   :  { %1403 = vmatmul.msk.f32.gmra.mxu3 %vm128_vm7, %v716_v2 }
0x226f   :  { %v1263_v7 = vpop.permute.xlu0 %1262 }
0x2270   :  { %v1265_v9 = vadd.f32 %v1514_v41, %v1263_v7 }
0x2272   :  { %1268 = vrot.lane.b32.xlu2 %v1265_v9, %s1522_s21 }
0x228e   :  { %v784_v10 = vpop.f32.mrf.mxu3 }
0x228f   :  { %v785_v12 = vadd.f32 %v784_v10, %v1675_v51 }
0x2291   :  { %794 = vst.msk [vmem:[#allocation2 + $0x38] sm:$0xff] %vm118_vm2, %v785_v12 }
0x2298   :  { %v1266_v16 = vld [vmem:[#allocation2 + $0x38] sm:$0xff] }
0x22cc   :  { %v1269_v13 = vpop.permute.xlu2 %1268 }
0x22cd   :  { %1417 = vmatmul.msk.f32.vlgmr.msrb.gmra.mxu2 %vm128_vm7, %v1269_v13 }
0x2350   :  { %v1289_v14 = vpop.f32.mrf.mxu2 }
0x2351   :  { %v1290_v15 = vadd.f32 %v1289_v14, %v1813_v49 }
0x2353   :  { %1313 = vrot.lane.b32.xlu0 %v1290_v15, %s1522_s21  ;;  %v1292_v17 = vadd.f32 %v1290_v15, %v1266_v16 }
0x2355   :  { %v1418_v18 = vmul.f32 -1.442695, %v1292_v17 }
0x2357   :  { %1515 = vpow2.f32 %v1418_v18 }
0x235d   :  { %v1516_v19 = vpop.eup %1515 }
0x235e   :  { %v1296_v20 = vadd.f32 1.0, %v1516_v19 }
0x2360   :  { %1517 = vrcp.f32 %v1296_v20  ;;  %v1308_v24 = vand.u32 2147483648, %v1296_v20  ;;  %vm1302_vm12 = vweird.f32 %v1296_v20  ;;  %v1306_v25 = vand.u32 2147483647, %v1296_v20 }
0x2362   :  { %v1309_v11 = vor.u32 1.1754944e-38, %v1308_v24  ;;  %vm1307_vm14 = vcmp.eq.f32.partialorder %v1306_v25, 8.507059e+37 }
0x2366   :  { %v1518_v8 = vpop.eup %1517 }
0x2367   :  { %v1298_v21 = vmul.f32 %v1518_v8, %v1296_v20  ;;  %vm1303_vm2 = vweird.f32 %v1518_v8 }
0x2368   :  { %vm1304_vm13 = vmor %vm1302_vm12, %vm1303_vm2 }
0x2369   :  { %v1299_v51 = vsub.f32 1.0, %v1298_v21 }
0x236b   :  { %v1300_v22 = vmul.f32 %v1518_v8, %v1299_v51 }
0x236d   :  { %v1301_v23 = vadd.f32 %v1518_v8, %v1300_v22 }
0x236f   :  { %v1305_v49 = vsel %vm1304_vm13, %v1518_v8, %v1301_v23 }
0x2370   :  { %v1310_v26 = vsel %vm1307_vm14, %v1309_v11, %v1305_v49 }
0x23c5   :  { %v1314_v6 = vpop.permute.xlu0 %1313 }
0x23c6   :  { %v1316_v27 = vmul.f32 %v1314_v6, %v1310_v26 }
0x23c8   :  { %1318 = vrot.lane.b32.xlu1 %v1316_v27, %s1522_s21 }
0x243a   :  { %v1319_v28 = vpop.permute.xlu1 %1318 }
0x243b   :  { %v1321_v29 = vadd.f32 %v1319_v28, %v1266_v16 }
0x243d   :  { %1519 = vtanh.f32 %v1321_v29 }
0x2443   :  { %v1520_v30 = vpop.eup %1519 }
0x2444   :  { %v1323_v1 = vsub.f32 %v1265_v9, %v1520_v30 }
0x2446   :  { %1325 = vrot.lane.b32.xlu2 %v1323_v1, %s1523_s3 }
0x24a0   :  { %v1326_v31 = vpop.permute.xlu2 %1325 }
0x24a1   :  { %v1328_v3 = vmul.f32 %v1326_v31, %v1310_v26 }
0x24a3   :  { %1330 = vrot.lane.b32.xlu0 %v1328_v3, %s1524_s22 }
0x2515   :  { %v1331_v34 = vpop.permute.xlu0 %1330 }
0x2516   :  { %v1333_v35 = vadd.f32 %v1520_v30, %v1331_v34 }
0x2518   :  { %1343 = vrot.lane.b32.xlu1 %v1333_v35, %s1522_s21 }
0x258a   :  { %v1344_v36 = vpop.permute.xlu1 %1343 }
0x258b   :  { %1419 = vmatmul.msk.f32.vlgmr.msrb.gmra.mxu1 %vm128_vm7, %v1344_v36 }
0x2608   :  { %v1364_v38 = vpop.f32.mrf.mxu1 }
0x2609   :  { %v1365_v40 = vadd.f32 %v1424_v37, %v1364_v38 }
0x260b   :  { %1367 = vst.msk [vmem:[%s1944_s9] sm:$0xff] %vm48_vm1, %v1365_v40 }

</bundles_post_ra>
